<compile_context>
chip_gen: v7x
topology: tpu7x:2x2x1
jax: 0.10.0
libtpu: 0.0.40
codegen_flags: <defaults>
</compile_context>

<pallas_src>
import functools

import jax
import jax.numpy as jnp
from jax.experimental import pallas as pl
from jax.experimental.pallas import tpu as pltpu

HP = 128        # lane-padded hidden width (one vreg lane tile)
_SUBLANE = 8


def _round_up(x, m):
    return ((x + m - 1) // m) * m


# -----------------------------------------------------------------------------
# Kernel: whole MLP hot path for one tile of `tile_m` stacked rows.
# -----------------------------------------------------------------------------
def _fwd_dyn_kernel(x_ref, w1_ref, b1_ref, wh_ref, bh_ref, wed_ref, bed_ref,
                    msg_ref, partials_ref, *, hp, msg_out, tile_m, n_valid,
                    has_tail):
    f32 = jnp.float32

    # Activations streamed as bf16; upcast before the MXU so matmul math is f32.
    x = x_ref[...].astype(f32)                                   # [tile_m, k_pad]

    # Fused first layer:
    #   [next_obs | curr_obs,msgs,actions] @ blockdiag(rand_prj, input_layer)
    h = jnp.maximum(
        jnp.dot(x, w1_ref[...], preferred_element_type=f32) + b1_ref[...], 0.0)
    next_obs_emb = h[:, :hp]      # relu(rand_prj(next_obs))      (lane-padded)
    temp = h[:, hp:]              # relu(input_layer(cat(...)))   (lane-padded)

    # pred_next_obs_emb = relu(hidden_layer(temp)); diff = pred - next_obs_emb
    pred = jnp.maximum(
        jnp.dot(temp, wh_ref[...], preferred_element_type=f32) + bh_ref[...], 0.0)
    diff = pred - next_obs_emb

    # Fused encoder+decoder: one 256-wide matmul.
    #   lanes [:hp]  -> msg      = diff @ We + be
    #   lanes [hp:]  -> reconstr = diff @ (We @ Wd) + (be @ Wd + bd)
    mr = jnp.dot(diff, wed_ref[...], preferred_element_type=f32) + bed_ref[...]
    err = mr[:, hp:] - diff                                      # reconstr - diff

    # Narrow message writeback (only the real msg_out columns hit HBM).
    msg_ref[...] = mr[:, :msg_out]

    # Padded *columns* of diff / reconstr are exactly zero by construction of the
    # packed (zero-padded) weights and biases, so no column mask is needed.
    d2 = jnp.sum(diff * diff, axis=0, keepdims=True)             # [1, hp]
    e2 = jnp.sum(err * err, axis=0, keepdims=True)               # [1, hp]

    if not has_tail:
        # n is a multiple of tile_m: no padded rows anywhere.
        partials_ref[0, 0:1, :] = d2
        partials_ref[0, 1:2, :] = e2
    else:
        i = pl.program_id(0)
        last = pl.num_programs(0) - 1

        @pl.when(i != last)
        def _():
            partials_ref[0, 0:1, :] = d2
            partials_ref[0, 1:2, :] = e2

        @pl.when(i == last)  # only the final tile holds padded rows
        def _():
            row = jax.lax.broadcasted_iota(jnp.int32, (tile_m, 1), 0) + i * tile_m
            rmask = row < n_valid
            dm = jnp.where(rmask, diff, 0.0)
            em = jnp.where(rmask, err, 0.0)
            partials_ref[0, 0:1, :] = jnp.sum(dm * dm, axis=0, keepdims=True)
            partials_ref[0, 1:2, :] = jnp.sum(em * em, axis=0, keepdims=True)


# -----------------------------------------------------------------------------
# One-time parameter packing (hoisted out of the hot path).
# PyTorch nn.Linear stores W as [out, in]; here: pre-transposed + lane-padded.
# -----------------------------------------------------------------------------
def pack_params(params, *, obs_dims, fc1_in, hidden, msg_out, hp=HP):
    f32 = jnp.float32
    hi = jax.lax.Precision.HIGHEST
    k_pad = _round_up(obs_dims + fc1_in, _SUBLANE)

    # Block-diagonal fused first layer: [next_obs | fc1_in] -> [rand_prj | input_layer]
    w1 = jnp.zeros((k_pad, 2 * hp), f32)
    w1 = w1.at[:obs_dims, :hidden].set(params["rand_prj_w"].T.astype(f32))
    w1 = w1.at[obs_dims:obs_dims + fc1_in, hp:hp + hidden].set(
        params["input_w"].T.astype(f32))
    b1 = jnp.zeros((1, 2 * hp), f32)
    b1 = b1.at[0, :hidden].set(params["rand_prj_b"].astype(f32))
    b1 = b1.at[0, hp:hp + hidden].set(params["input_b"].astype(f32))

    def pad_wb(w, b, in_dim, out_dim):
        wp = jnp.zeros((hp, hp), f32).at[:in_dim, :out_dim].set(w.T.astype(f32))
        bp = jnp.zeros((1, hp), f32).at[0, :out_dim].set(b.astype(f32))
        return wp, bp

    wh, bh = pad_wb(params["hidden_w"], params["hidden_b"], hidden, hidden)
    we, be = pad_wb(params["enc_w"], params["enc_b"], hidden, msg_out)
    wd, bd = pad_wb(params["dec_w"], params["dec_b"], msg_out, hidden)

    # Fused encoder->decoder composition.  Padded columns of the composed block
    # stay exactly zero, which the ae_loss normalization (÷ n*hidden) relies on.
    wcomp = jnp.dot(we, wd, precision=hi)
    bcomp = jnp.dot(be, wd, precision=hi) + bd
    wed = jnp.concatenate([we, wcomp], axis=1)      # [hp, 2*hp]
    bed = jnp.concatenate([be, bcomp], axis=1)      # [1, 2*hp]

    return dict(w1=w1, b1=b1, wh=wh, bh=bh, wed=wed, bed=bed)


# -----------------------------------------------------------------------------
# Forward over a stack of rows (= all timesteps of all episodes, flattened).
# Returns (msg, loss, ae_loss) matching FwdDynamicModel.forward semantics.
# -----------------------------------------------------------------------------
def fwd_dynamic_model_forward(packed, curr_obs, msgs, actions, next_obs, *,
                              hidden, msg_out, tile_m=512, hp=HP,
                              activation_dtype=jnp.bfloat16):
    f32 = jnp.float32
    n = curr_obs.shape[0]
    k_pad = packed["w1"].shape[0]

    # cat([curr_obs, msgs, actions]) prefixed with next_obs for the fused first
    # layer; columns zero-padded up to the sublane multiple chosen at pack time.
    x_all = jnp.concatenate([next_obs, curr_obs, msgs, actions], axis=-1)
    k_in = x_all.shape[1]
    if k_pad != k_in:
        x_all = jnp.pad(x_all, ((0, 0), (0, k_pad - k_in)))
    x_all = x_all.astype(activation_dtype)   # bf16: halves the dominant HBM read

    # Row tiling: large tiles amortize per-grid-step overhead; keep >= 2 grid
    # steps so the "parallel" axis can shard across v7x's two TensorCores.
    # (Callers should prefer n such that n_tiles comes out even on v7x.)
    tile = max(_SUBLANE, int(tile_m))
    while tile > 128 and pl.cdiv(n, tile) < 2:
        tile //= 2
    n_tiles = pl.cdiv(n, tile)
    n_pad = n_tiles * tile
    if n_pad != n:
        x_all = jnp.pad(x_all, ((0, n_pad - n), (0, 0)))

    kernel = functools.partial(
        _fwd_dyn_kernel, hp=hp, msg_out=msg_out, tile_m=tile, n_valid=n,
        has_tail=(n_pad != n))

    flops = 2 * n_pad * (k_pad * 2 * hp + hp * hp + hp * 2 * hp)
    bytes_accessed = (x_all.size * x_all.dtype.itemsize
                      + 4 * (n_pad * msg_out + n_tiles * 2 * hp
                             + k_pad * 2 * hp + 2 * hp          # w1, b1
                             + hp * hp + hp                     # wh, bh
                             + hp * 2 * hp + 2 * hp))           # wed, bed

    cp_kwargs = dict(dimension_semantics=("parallel",))
    if tile > 2048:  # VMEM headroom only needed for very large row tiles
        cp_kwargs["vmem_limit_bytes"] = 64 * 1024 * 1024

    msg_pad, partials = pl.pallas_call(
        kernel,
        out_shape=(
            jax.ShapeDtypeStruct((n_pad, msg_out), f32),      # narrow msg
            jax.ShapeDtypeStruct((n_tiles, 2, hp), f32),      # loss partial sums
        ),
        grid_spec=pltpu.PrefetchScalarGridSpec(
            num_scalar_prefetch=0,
            grid=(n_tiles,),
            in_specs=[
                pl.BlockSpec((tile, k_pad), lambda i: (i, 0)),      # activations (streamed)
                pl.BlockSpec((k_pad, 2 * hp), lambda i: (0, 0)),    # weights: VMEM-resident
                pl.BlockSpec((1, 2 * hp), lambda i: (0, 0)),
                pl.BlockSpec((hp, hp), lambda i: (0, 0)),
                pl.BlockSpec((1, hp), lambda i: (0, 0)),
                pl.BlockSpec((hp, 2 * hp), lambda i: (0, 0)),
                pl.BlockSpec((1, 2 * hp), lambda i: (0, 0)),
            ],
            out_specs=[
                pl.BlockSpec((tile, msg_out), lambda i: (i, 0)),
                pl.BlockSpec((1, 2, hp), lambda i: (i, 0, 0)),
            ],
        ),
        compiler_params=pltpu.CompilerParams(**cp_kwargs),
        cost_estimate=pl.CostEstimate(flops=flops, transcendentals=0,
                                      bytes_accessed=bytes_accessed),
    )(x_all, packed["w1"], packed["b1"], packed["wh"], packed["bh"],
      packed["wed"], packed["bed"])

    msg = msg_pad[:n]                                     # drop padded rows only
    loss = jnp.sum(partials[:, 0, :])                     # (diff ** 2).sum()
    ae_loss = jnp.sum(partials[:, 1, :]) / (n * hidden)   # mse_loss(reconstr, diff)
    return msg, loss, ae_loss


# -----------------------------------------------------------------------------
# JAX port of FwdDynamicModel._build_inputs for t=None (all timesteps stacked).
# -----------------------------------------------------------------------------
def build_inputs_all_t(batch, agent_idx, n_agents, msg_in_len):
    bs, T = batch["obs"].shape[:2]
    obs = batch["obs"][:, :, agent_idx]                      # [bs, T, obs_dims]
    curr_obs = obs[:, :-1]
    next_obs = obs[:, 1:]
    msg_pad = jnp.zeros((bs, 1, (n_agents - 1) * msg_in_len), jnp.float32)
    prev = batch["messages"][:, :-2, :agent_idx].reshape(bs, T - 2, -1)
    nxt = batch["messages"][:, :-2, agent_idx + 1:].reshape(bs, T - 2, -1)
    msgs = jnp.concatenate([prev, nxt], axis=-1)
    msgs = jnp.concatenate([msg_pad, msgs], axis=1)          # [bs, T-1, msg_tot]
    actions = batch["actions_onehot"][:, :-1, agent_idx]     # [bs, T-1, n_actions]
    flat = lambda a: a.reshape(bs * (T - 1), -1)
    return flat(curr_obs), flat(msgs), flat(actions), flat(next_obs)


def _reference_forward(params, curr_obs, msgs, actions, next_obs):
    """Pure-JAX reference mirroring the PyTorch forward (for validation)."""
    hi = jax.lax.Precision.HIGHEST
    lin = lambda x, w, b: jnp.dot(x, w.T, precision=hi) + b
    next_obs_emb = jax.nn.relu(lin(next_obs, params["rand_prj_w"], params["rand_prj_b"]))
    temp = jnp.concatenate([curr_obs, msgs, actions], axis=-1)
    temp = jax.nn.relu(lin(temp, params["input_w"], params["input_b"]))
    pred = jax.nn.relu(lin(temp, params["hidden_w"], params["hidden_b"]))
    diff = pred - next_obs_emb
    msg = lin(diff, params["enc_w"], params["enc_b"])
    reconstr = lin(msg, params["dec_w"], params["dec_b"])
    ae_loss = jnp.mean((reconstr - diff) ** 2)
    loss = jnp.sum(diff ** 2)
    return msg, loss, ae_loss


if __name__ == "__main__":
    # ---- configuration (small, consistent with the module) ----
    bs = 32
    T = 10                      # max_seq_length -> 288 stacked rows (exercises tail masking)
    n_agents = 3
    obs_dims = 16
    n_actions = 6
    msg_len = 4                 # scheme['messages']['vshape'], msg_fusion=False
    hidden_dims = 64            # module default
    msg_in_len = msg_len
    msg_out_len = msg_len
    fc1_in = obs_dims + (n_agents - 1) * msg_len + n_actions
    agent_idx = 1

    key = jax.random.PRNGKey(0)
    ks = jax.random.split(key, 16)

    def init_linear(kw, kb, out_dim, in_dim):
        lim = 1.0 / jnp.sqrt(in_dim)
        w = jax.random.uniform(kw, (out_dim, in_dim), jnp.float32, -lim, lim)
        b = jax.random.uniform(kb, (out_dim,), jnp.float32, -lim, lim)
        return w, b

    params = {}
    params["rand_prj_w"], params["rand_prj_b"] = init_linear(ks[0], ks[1], hidden_dims, obs_dims)
    params["input_w"],    params["input_b"]    = init_linear(ks[2], ks[3], hidden_dims, fc1_in)
    params["hidden_w"],   params["hidden_b"]   = init_linear(ks[4], ks[5], hidden_dims, hidden_dims)
    params["enc_w"],      params["enc_b"]      = init_linear(ks[6], ks[7], msg_out_len, hidden_dims)
    params["dec_w"],      params["dec_b"]      = init_linear(ks[8], ks[9], hidden_dims, msg_out_len)

    # synthetic episode batch
    batch = {
        "obs": jax.random.normal(ks[10], (bs, T, n_agents, obs_dims), jnp.float32),
        "messages": jax.random.normal(ks[11], (bs, T, n_agents, msg_len), jnp.float32),
        "actions_onehot": jax.nn.one_hot(
            jax.random.randint(ks[12], (bs, T, n_agents), 0, n_actions), n_actions
        ).astype(jnp.float32),
    }

    # t == 0 path of forward(): zeros msg, no losses (no kernel work needed).
    msg_t0 = jnp.zeros((bs, msg_out_len), jnp.float32)

    # One-time packing (pre-transposed, lane-padded, block-diag first layer,
    # fused encoder+decoder RHS).
    packed = pack_params(params, obs_dims=obs_dims, fc1_in=fc1_in,
                         hidden=hidden_dims, msg_out=msg_out_len)
    packed = jax.tree_util.tree_map(jax.block_until_ready, packed)

    # Hot path: one gridded call over all stacked timesteps.
    fwd = jax.jit(functools.partial(fwd_dynamic_model_forward,
                                    hidden=hidden_dims, msg_out=msg_out_len,
                                    tile_m=512, activation_dtype=jnp.bfloat16))

    curr_obs, msgs, actions, next_obs = build_inputs_all_t(
        batch, agent_idx, n_agents, msg_in_len)

    msg, loss, ae_loss = fwd(packed, curr_obs, msgs, actions, next_obs)
    jax.block_until_ready((msg, loss, ae_loss))

    # Validate against a pure-JAX reference fed the same bf16-quantized
    # activations (the only intended numeric deviation from the f32 module).
    q = lambda a: a.astype(jnp.bfloat16).astype(jnp.float32)
    msg_r, loss_r, ae_loss_r = _reference_forward(
        params, q(curr_obs), q(msgs), q(actions), q(next_obs))

    assert jnp.allclose(msg, msg_r, atol=1e-3, rtol=1e-3), "msg mismatch"
    assert jnp.allclose(loss, loss_r, atol=5e-2, rtol=1e-3), "loss mismatch"
    assert jnp.allclose(ae_loss, ae_loss_r, atol=1e-4, rtol=1e-3), "ae_loss mismatch"

    print("KERNEL_OK")
</pallas_src>

<mosaic_0001>
module attributes {stable_mosaic.version = 11 : i64} {
  func.func @_fwd_dyn_kernel(%arg0: i32, %arg1: memref<256x48xbf16, #tpu.memory_space<vmem>>, %arg2: memref<48x256xf32, #tpu.memory_space<vmem>>, %arg3: memref<1x256xf32, #tpu.memory_space<vmem>>, %arg4: memref<128x128xf32, #tpu.memory_space<vmem>>, %arg5: memref<1x128xf32, #tpu.memory_space<vmem>>, %arg6: memref<128x256xf32, #tpu.memory_space<vmem>>, %arg7: memref<1x256xf32, #tpu.memory_space<vmem>>, %arg8: memref<256x4xf32, #tpu.memory_space<vmem>>, %arg9: memref<1x2x128xf32, #tpu.memory_space<vmem>>) attributes {dimension_semantics = [#tpu.dimension_semantics<parallel>], iteration_bounds = array<i64: 2>, scalar_prefetch = 0 : i64, scratch_operands = 0 : i64, tpu.core_type = #tpu.core_type<tc>, window_params = [{transform_indices = @transform_0, window_bounds = array<i64: 256, 48>}, {pipeline_mode = #tpu.pipeline_mode<synchronous>, transform_indices = @transform_1, window_bounds = array<i64: 48, 256>}, {pipeline_mode = #tpu.pipeline_mode<synchronous>, transform_indices = @transform_2, window_bounds = array<i64: 1, 256>}, {pipeline_mode = #tpu.pipeline_mode<synchronous>, transform_indices = @transform_3, window_bounds = array<i64: 128, 128>}, {pipeline_mode = #tpu.pipeline_mode<synchronous>, transform_indices = @transform_4, window_bounds = array<i64: 1, 128>}, {pipeline_mode = #tpu.pipeline_mode<synchronous>, transform_indices = @transform_5, window_bounds = array<i64: 128, 256>}, {pipeline_mode = #tpu.pipeline_mode<synchronous>, transform_indices = @transform_6, window_bounds = array<i64: 1, 256>}, {transform_indices = @transform_7, window_bounds = array<i64: 256, 4>}, {transform_indices = @transform_8, window_bounds = array<i64: 1, 2, 128>}]} {
    %c0 = arith.constant 0 : index
    %c0_0 = arith.constant 0 : index
    %0 = vector.load %arg1[%c0, %c0_0] : memref<256x48xbf16, #tpu.memory_space<vmem>>, vector<256x48xbf16>
    %1 = arith.extf %0 : vector<256x48xbf16> to vector<256x48xf32>
    %c0_1 = arith.constant 0 : index
    %c0_2 = arith.constant 0 : index
    %2 = vector.load %arg2[%c0_1, %c0_2] : memref<48x256xf32, #tpu.memory_space<vmem>>, vector<48x256xf32>
    %cst = arith.constant dense<0.000000e+00> : vector<256x256xf32>
    %3 = tpu.matmul %1, %2, %cst {dimension_numbers = #tpu.dot_dimension_numbers<[1], [0], [0], [1], [0, 0, 1, 1], [], []>} : vector<256x48xf32>, vector<48x256xf32>, vector<256x256xf32> -> vector<256x256xf32>
    %c0_3 = arith.constant 0 : index
    %c0_4 = arith.constant 0 : index
    %4 = vector.load %arg3[%c0_3, %c0_4] : memref<1x256xf32, #tpu.memory_space<vmem>>, vector<1x256xf32>
    %5 = vector.broadcast %4 : vector<1x256xf32> to vector<256x256xf32>
    %6 = arith.addf %3, %5 : vector<256x256xf32>
    %cst_5 = arith.constant 0.000000e+00 : f32
    %7 = vector.broadcast %cst_5 : f32 to vector<256x256xf32>
    %8 = arith.maximumf %6, %7 : vector<256x256xf32>
    %9 = vector.extract_strided_slice %8 {offsets = [0, 0], sizes = [256, 128], strides = [1, 1]} : vector<256x256xf32> to vector<256x128xf32>
    %10 = vector.extract_strided_slice %8 {offsets = [0, 128], sizes = [256, 128], strides = [1, 1]} : vector<256x256xf32> to vector<256x128xf32>
    %c0_6 = arith.constant 0 : index
    %c0_7 = arith.constant 0 : index
    %11 = vector.load %arg4[%c0_6, %c0_7] : memref<128x128xf32, #tpu.memory_space<vmem>>, vector<128x128xf32>
    %cst_8 = arith.constant dense<0.000000e+00> : vector<256x128xf32>
    %12 = tpu.matmul %10, %11, %cst_8 {dimension_numbers = #tpu.dot_dimension_numbers<[1], [0], [0], [1], [0, 0, 1, 1], [], []>} : vector<256x128xf32>, vector<128x128xf32>, vector<256x128xf32> -> vector<256x128xf32>
    %c0_9 = arith.constant 0 : index
    %c0_10 = arith.constant 0 : index
    %13 = vector.load %arg5[%c0_9, %c0_10] : memref<1x128xf32, #tpu.memory_space<vmem>>, vector<1x128xf32>
    %14 = vector.broadcast %13 : vector<1x128xf32> to vector<256x128xf32>
    %15 = arith.addf %12, %14 : vector<256x128xf32>
    %cst_11 = arith.constant 0.000000e+00 : f32
    %16 = vector.broadcast %cst_11 : f32 to vector<256x128xf32>
    %17 = arith.maximumf %15, %16 : vector<256x128xf32>
    %18 = arith.subf %17, %9 : vector<256x128xf32>
    %c0_12 = arith.constant 0 : index
    %c0_13 = arith.constant 0 : index
    %19 = vector.load %arg6[%c0_12, %c0_13] : memref<128x256xf32, #tpu.memory_space<vmem>>, vector<128x256xf32>
    %cst_14 = arith.constant dense<0.000000e+00> : vector<256x256xf32>
    %20 = tpu.matmul %18, %19, %cst_14 {dimension_numbers = #tpu.dot_dimension_numbers<[1], [0], [0], [1], [0, 0, 1, 1], [], []>} : vector<256x128xf32>, vector<128x256xf32>, vector<256x256xf32> -> vector<256x256xf32>
    %c0_15 = arith.constant 0 : index
    %c0_16 = arith.constant 0 : index
    %21 = vector.load %arg7[%c0_15, %c0_16] : memref<1x256xf32, #tpu.memory_space<vmem>>, vector<1x256xf32>
    %22 = vector.broadcast %21 : vector<1x256xf32> to vector<256x256xf32>
    %23 = arith.addf %20, %22 : vector<256x256xf32>
    %24 = vector.extract_strided_slice %23 {offsets = [0, 128], sizes = [256, 128], strides = [1, 1]} : vector<256x256xf32> to vector<256x128xf32>
    %25 = arith.subf %24, %18 : vector<256x128xf32>
    %26 = vector.extract_strided_slice %23 {offsets = [0, 0], sizes = [256, 4], strides = [1, 1]} : vector<256x256xf32> to vector<256x4xf32>
    %c0_17 = arith.constant 0 : index
    %c0_18 = arith.constant 0 : index
    %27 = vector.load %arg8[%c0_17, %c0_18] : memref<256x4xf32, #tpu.memory_space<vmem>>, vector<256x4xf32>
    tpu.vector_store %arg8[%c0_17, %c0_18], %26 {strides = array<i32>} : memref<256x4xf32, #tpu.memory_space<vmem>>, vector<256x4xf32>,
    %28 = arith.mulf %18, %18 : vector<256x128xf32>
    %cst_19 = arith.constant dense<0.000000e+00> : vector<128xf32>
    %29 = vector.multi_reduction <add>, %28, %cst_19 [0] : vector<256x128xf32> to vector<128xf32>
    %30 = vector.shape_cast %29 : vector<128xf32> to vector<1x128xf32>
    %31 = arith.mulf %25, %25 : vector<256x128xf32>
    %cst_20 = arith.constant dense<0.000000e+00> : vector<128xf32>
    %32 = vector.multi_reduction <add>, %31, %cst_20 [0] : vector<256x128xf32> to vector<128xf32>
    %33 = vector.shape_cast %32 : vector<128xf32> to vector<1x128xf32>
    %c1_i32 = arith.constant 1 : i32
    %34 = arith.cmpi ne, %arg0, %c1_i32 : i32
    %35 = arith.extui %34 : i1 to i32
    %c0_i32 = arith.constant 0 : i32
    %36 = arith.cmpi ne, %35, %c0_i32 : i32
    scf.if %36 {
      %c0_23 = arith.constant 0 : index
      %c0_24 = arith.constant 0 : index
      %c0_25 = arith.constant 0 : index
      %40 = vector.load %arg9[%c0_23, %c0_24, %c0_25] : memref<1x2x128xf32, #tpu.memory_space<vmem>>, vector<1x1x128xf32>
      %41 = vector.shape_cast %40 : vector<1x1x128xf32> to vector<1x128xf32>
      %42 = vector.shape_cast %30 : vector<1x128xf32> to vector<1x1x128xf32>
      tpu.vector_store %arg9[%c0_23, %c0_24, %c0_25], %42 {strides = array<i32>} : memref<1x2x128xf32, #tpu.memory_space<vmem>>, vector<1x1x128xf32>,
      %c0_26 = arith.constant 0 : index
      %c1 = arith.constant 1 : index
      %c0_27 = arith.constant 0 : index
      %43 = vector.load %arg9[%c0_26, %c1, %c0_27] : memref<1x2x128xf32, #tpu.memory_space<vmem>>, vector<1x1x128xf32>
      %44 = vector.shape_cast %43 : vector<1x1x128xf32> to vector<1x128xf32>
      %45 = vector.shape_cast %33 : vector<1x128xf32> to vector<1x1x128xf32>
      tpu.vector_store %arg9[%c0_26, %c1, %c0_27], %45 {strides = array<i32>} : memref<1x2x128xf32, #tpu.memory_space<vmem>>, vector<1x1x128xf32>,
    } else {
    }
    %c1_i32_21 = arith.constant 1 : i32
    %37 = arith.cmpi eq, %arg0, %c1_i32_21 : i32
    %38 = arith.extui %37 : i1 to i32
    %c0_i32_22 = arith.constant 0 : i32
    %39 = arith.cmpi ne, %38, %c0_i32_22 : i32
    scf.if %39 {
      %40 = tpu.iota {dimensions = array<i32: 0>} : vector<256x1xi32>
      %c256_i32 = arith.constant 256 : i32
      %41 = arith.muli %arg0, %c256_i32 : i32
      %42 = vector.broadcast %41 : i32 to vector<256x1xi32>
      %43 = arith.addi %40, %42 : vector<256x1xi32>
      %c288_i32 = arith.constant 288 : i32
      %44 = vector.broadcast %c288_i32 : i32 to vector<256x1xi32>
      %45 = arith.cmpi slt, %43, %44 : vector<256x1xi32>
      %cst_23 = arith.constant 0.000000e+00 : f32
      %46 = vector.shape_cast %45 : vector<256x1xi1> to vector<256x1xi1>
      %47 = vector.broadcast %46 : vector<256x1xi1> to vector<256x128xi1>
      %48 = vector.broadcast %cst_23 : f32 to vector<256x128xf32>
      %49 = arith.select %47, %18, %48 : vector<256x128xi1>, vector<256x128xf32>
      %cst_24 = arith.constant 0.000000e+00 : f32
      %50 = vector.shape_cast %45 : vector<256x1xi1> to vector<256x1xi1>
      %51 = vector.broadcast %50 : vector<256x1xi1> to vector<256x128xi1>
      %52 = vector.broadcast %cst_24 : f32 to vector<256x128xf32>
      %53 = arith.select %51, %25, %52 : vector<256x128xi1>, vector<256x128xf32>
      %54 = arith.mulf %49, %49 : vector<256x128xf32>
      %cst_25 = arith.constant dense<0.000000e+00> : vector<128xf32>
      %55 = vector.multi_reduction <add>, %54, %cst_25 [0] : vector<256x128xf32> to vector<128xf32>
      %56 = vector.shape_cast %55 : vector<128xf32> to vector<1x128xf32>
      %c0_26 = arith.constant 0 : index
      %c0_27 = arith.constant 0 : index
      %c0_28 = arith.constant 0 : index
      %57 = vector.load %arg9[%c0_26, %c0_27, %c0_28] : memref<1x2x128xf32, #tpu.memory_space<vmem>>, vector<1x1x128xf32>
      %58 = vector.shape_cast %57 : vector<1x1x128xf32> to vector<1x128xf32>
      %59 = vector.shape_cast %56 : vector<1x128xf32> to vector<1x1x128xf32>
      tpu.vector_store %arg9[%c0_26, %c0_27, %c0_28], %59 {strides = array<i32>} : memref<1x2x128xf32, #tpu.memory_space<vmem>>, vector<1x1x128xf32>,
      %60 = arith.mulf %53, %53 : vector<256x128xf32>
      %cst_29 = arith.constant dense<0.000000e+00> : vector<128xf32>
      %61 = vector.multi_reduction <add>, %60, %cst_29 [0] : vector<256x128xf32> to vector<128xf32>
      %62 = vector.shape_cast %61 : vector<128xf32> to vector<1x128xf32>
      %c0_30 = arith.constant 0 : index
      %c1 = arith.constant 1 : index
      %c0_31 = arith.constant 0 : index
      %63 = vector.load %arg9[%c0_30, %c1, %c0_31] : memref<1x2x128xf32, #tpu.memory_space<vmem>>, vector<1x1x128xf32>
      %64 = vector.shape_cast %63 : vector<1x1x128xf32> to vector<1x128xf32>
      %65 = vector.shape_cast %62 : vector<1x128xf32> to vector<1x1x128xf32>
      tpu.vector_store %arg9[%c0_30, %c1, %c0_31], %65 {strides = array<i32>} : memref<1x2x128xf32, #tpu.memory_space<vmem>>, vector<1x1x128xf32>,
    } else {
    }
    return
  }
  func.func @transform_0(%arg0: i32) -> (i32, i32) {
    %c0_i32 = arith.constant 0 : i32
    %c0_i32_0 = arith.constant 0 : i32
    return %arg0, %c0_i32 : i32, i32
  }
  func.func @transform_1(%arg0: i32) -> (i32, i32) {
    %c0_i32 = arith.constant 0 : i32
    %c0_i32_0 = arith.constant 0 : i32
    %c0_i32_1 = arith.constant 0 : i32
    return %c0_i32, %c0_i32_0 : i32, i32
  }
  func.func @transform_2(%arg0: i32) -> (i32, i32) {
    %c0_i32 = arith.constant 0 : i32
    %c0_i32_0 = arith.constant 0 : i32
    %c0_i32_1 = arith.constant 0 : i32
    return %c0_i32, %c0_i32_0 : i32, i32
  }
  func.func @transform_3(%arg0: i32) -> (i32, i32) {
    %c0_i32 = arith.constant 0 : i32
    %c0_i32_0 = arith.constant 0 : i32
    %c0_i32_1 = arith.constant 0 : i32
    return %c0_i32, %c0_i32_0 : i32, i32
  }
  func.func @transform_4(%arg0: i32) -> (i32, i32) {
    %c0_i32 = arith.constant 0 : i32
    %c0_i32_0 = arith.constant 0 : i32
    %c0_i32_1 = arith.constant 0 : i32
    return %c0_i32, %c0_i32_0 : i32, i32
  }
  func.func @transform_5(%arg0: i32) -> (i32, i32) {
    %c0_i32 = arith.constant 0 : i32
    %c0_i32_0 = arith.constant 0 : i32
    %c0_i32_1 = arith.constant 0 : i32
    return %c0_i32, %c0_i32_0 : i32, i32
  }
  func.func @transform_6(%arg0: i32) -> (i32, i32) {
    %c0_i32 = arith.constant 0 : i32
    %c0_i32_0 = arith.constant 0 : i32
    %c0_i32_1 = arith.constant 0 : i32
    return %c0_i32, %c0_i32_0 : i32, i32
  }
  func.func @transform_7(%arg0: i32) -> (i32, i32) {
    %c0_i32 = arith.constant 0 : i32
    %c0_i32_0 = arith.constant 0 : i32
    return %arg0, %c0_i32 : i32, i32
  }
  func.func @transform_8(%arg0: i32) -> (i32, i32, i32) {
    %c0_i32 = arith.constant 0 : i32
    %c0_i32_0 = arith.constant 0 : i32
    %c0_i32_1 = arith.constant 0 : i32
    return %arg0, %c0_i32, %c0_i32_0 : i32, i32, i32
  }
}

</mosaic_0001>

<bundles_post_ra>
// kernel: fwd_dynamic_model_forward.1
= control target key start
LH: loop header
LB: loop body
LE: loop exit
PB: predicated region body
PF: predicated region fallthrough
CT: control target
= control target key end

     0   :  { %s2516_s27 = smov 0   ;;  %s3904_s0 = inlined_call_operand.vmem [shape: bf16[512,48], index: 0, kind: input, shape index: {}]   ;;  %s3905_s1 = inlined_call_operand.vmem [shape: f32[48,256], index: 1, kind: input, shape index: {}]   ;;  %s3906_s2 = inlined_call_operand.vmem [shape: f32[1,256], index: 2, kind: input, shape index: {}]   ;;  %s3907_s3 = inlined_call_operand.vmem [shape: f32[128,128], index: 3, kind: input, shape index: {}]   ;;  %s3908_s4 = inlined_call_operand.vmem [shape: f32[1,128], index: 4, kind: input, shape index: {}]   ;;  %s3909_s5 = inlined_call_operand.vmem [shape: f32[128,256], index: 5, kind: input, shape index: {}]   ;;  %s3910_s6 = inlined_call_operand.vmem [shape: f32[1,256], index: 6, kind: input, shape index: {}]   ;;  %s3911_s7 = inlined_call_operand.vmem [shape: f32[512,4], index: 7, kind: output, shape index: {0}]   ;;  %s3912_s8 = inlined_call_operand.vmem [shape: f32[2,2,128], index: 8, kind: output, shape index: {1}]  }
   0x1 LB: > { %s2522_s28 = sadd.s32 4294967295, %s2468_s27   ;;  %p2110_p0 = scmp.ge.s32.totalorder %s2468_s27, 1  ;;  %s2468_s27 = sphi %s2516_s27, %s19_s27  }
   0x2   : > { %p266_p1 = scmp.lt.s32.totalorder %s2468_s27, 3 }
   0x4   : > { %p267_p2 = pnand %p2110_p0, %p266_p1 }
   0x6   : > { %270 = sbr.rel (%p267_p2) target bundleno = 932 (0x3a4), region = 48 }
   0xd   : > { %p316_p3 = scmp.lt.s32.totalorder %s2522_s28, 1  ;;  %v385_v0 = vld [vmem:[%s3905_s1 + $0x8] sm:$0xff]  ;;  %v387_v1 = vld [vmem:[%s3905_s1 + $0x18] sm:$0xff]  ;;  %v384_v2 = vld [vmem:[%s3905_s1] sm:$0xff]  ;;  %s2111_s13 = sshll.u32 %s2522_s28, 5  ;;  %v2470_v7 = vmov 0.0  }
   0xe   : > { %v2361_v3 = vpack.c.bf16 %v387_v1, %v385_v0  ;;  %v386_v4 = vld [vmem:[%s3905_s1 + $0x10] sm:$0xff]  ;;  %v389_v5 = vld [vmem:[%s3905_s1 + $0x28] sm:$0xff]  ;;  %v391_v6 = vld [vmem:[%s3905_s1 + $0x38] sm:$0xff]  ;;  %569 = vmatprep.mubr.f32.mxu0 %v2470_v7  ;;  %p305_p4 = scmp.lt.s32.totalorder %s2111_s13, 63  ;;  %vm408_vm0 = vcmask 392192   ;;  %vm1471_vm1 = vcmask 31744  }
   0xf   : > { %s317_s20 = scalar_select %p316_p3, %s2522_s28, 1  ;;  %v2363_v8 = vpack.c.bf16 %v386_v4, %v384_v2  ;;  %v2365_v9 = vpack.c.bf16 %v391_v6, %v389_v5  ;;  %v388_v10 = vld [vmem:[%s3905_s1 + $0x20] sm:$0xff]  ;;  %v390_v11 = vld [vmem:[%s3905_s1 + $0x30] sm:$0xff]  ;;  %v393_v12 = vld [vmem:[%s3905_s1 + $0x48] sm:$0xff] }
  0x10   : > { %2362 = vmatprep.subr.bf16.mxu0 %v2361_v3  ;;  %v395_v13 = vld [vmem:[%s3905_s1 + $0x58] sm:$0xff]  ;;  %s4022_s13 = smov (!%p305_p4, %s2111_s13), 63  ;;  %v2367_v14 = vpack.c.bf16 %v390_v11, %v388_v10  ;;  %v392_v16 = vld [vmem:[%s3905_s1 + $0x40] sm:$0xff]  ;;  %v394_v17 = vld [vmem:[%s3905_s1 + $0x50] sm:$0xff]  ;;  %p2149_p5 = scmp.eq.s32.totalorder %s2522_s28, 1 }
  0x11   : > { %s2115_s9 = sshll.u32 %s317_s20, 1  ;;  %2364 = vmatpush1.bf16.msra.mxu0 %v2363_v8  ;;  %v2369_v15 = vpack.c.bf16 %v395_v13, %v393_v12  ;;  %s2112_s18 = sshll.u32 %s4022_s13, 2  ;;  %v2371_v18 = vpack.c.bf16 %v394_v17, %v392_v16  ;;  %v826_v21 = vld [vmem:[%s3907_s3] sm:$0xff]  ;;  %v827_v22 = vld [vmem:[%s3907_s3 + $0x8] sm:$0xff]  ;;  %v828_v23 = vld [vmem:[%s3907_s3 + $0x10] sm:$0xff] }
  0x12   : > { %s2565_s12 = scalar_lea.vmem %s3912_s8, %s2115_s9  ;;  %2366 = vmatprep.subr.bf16.mxu0 %v2365_v9  ;;  %s2577_s21 = scalar_lea.vmem %s3904_s0, %s2112_s18  ;;  %v829_v24 = vld [vmem:[%s3907_s3 + $0x18] sm:$0xff]  ;;  %v2373_v27 = vpack.c.bf16 %v827_v22, %v826_v21  ;;  %v830_v29 = vld [vmem:[%s3907_s3 + $0x20] sm:$0xff]  ;;  %v831_v30 = vld [vmem:[%s3907_s3 + $0x28] sm:$0xff] }
  0x13   : > { %v2155_v19 = vld [vmem:[%s2577_s21] sm:$0xff]   ;;  %v2218_v26 = vld [vmem:[%s2577_s21 + $0x8] sm:$0xff]   ;;  %v2377_v28 = vpack.c.bf16 %v829_v24, %v828_v23  ;;  %v2381_v32 = vpack.c.bf16 %v831_v30, %v830_v29  ;;  %v832_v33 = vld [vmem:[%s3907_s3 + $0x30] sm:$0xff]  ;;  %s2114_s17 = sshll.u32 %s4022_s13, 3 }
  0x14   : > { %v2156_v20 = vunpack.c.l.bf16 %v2155_v19  ;;  %v2157_v25 = vunpack.c.h.bf16 %v2155_v19  ;;  %2374 = vmatprep.subr.bf16.mxu1 %v2373_v27  ;;  %v2160_v31 = vunpack.c.l.bf16 %v2218_v26  ;;  %v833_v34 = vld [vmem:[%s3907_s3 + $0x38] sm:$0xff]  ;;  %v2161_v35 = vunpack.c.h.bf16 %v2218_v26  ;;  %v2219_v36 = vld [vmem:[%s2577_s21 + $0x10] sm:$0xff]   ;;  %v834_v38 = vld [vmem:[%s3907_s3 + $0x40] sm:$0xff]  ;;  %s3227_s19 = scalar_lea.vmem %s3911_s7, %s2114_s17 }
  0x15   : > { %2368 = vmatpush1.bf16.msra.mxu0 %v2367_v14  ;;  %2376 = vmatpush3.bf16.msra.mxu1 %v2373_v27  ;;  %v2385_v37 = vpack.c.bf16 %v833_v34, %v832_v33  ;;  %v835_v39 = vld [vmem:[%s3907_s3 + $0x48] sm:$0xff]  ;;  %v2164_v40 = vunpack.c.l.bf16 %v2219_v36  ;;  %v836_v42 = vld [vmem:[%s3907_s3 + $0x50] sm:$0xff]  ;;  %v837_v43 = vld [vmem:[%s3907_s3 + $0x58] sm:$0xff]  ;;  %v2165_v44 = vunpack.c.h.bf16 %v2219_v36 }
  0x16   : > { %2370 = vmatprep.subr.bf16.mxu0 %v2369_v15  ;;  %2378 = vmatprep.subr.bf16.mxu1 %v2377_v28  ;;  %v2389_v41 = vpack.c.bf16 %v835_v39, %v834_v38  ;;  %v2220_v45 = vld [vmem:[%s2577_s21 + $0x18] sm:$0xff]   ;;  %v2393_v46 = vpack.c.bf16 %v837_v43, %v836_v42  ;;  %v2221_v49 = vld [vmem:[%s2577_s21 + $0x20] sm:$0xff]   ;;  %v2222_v52 = vld [vmem:[%s2577_s21 + $0x28] sm:$0xff]  }
  0x17   : > { %v2168_v47 = vunpack.c.l.bf16 %v2220_v45  ;;  %v2169_v48 = vunpack.c.h.bf16 %v2220_v45  ;;  %v2172_v50 = vunpack.c.l.bf16 %v2221_v49  ;;  %v2173_v51 = vunpack.c.h.bf16 %v2221_v49  ;;  %v2223_v55 = vld [vmem:[%s2577_s21 + $0x30] sm:$0xff]   ;;  %v2224_v58 = vld [vmem:[%s2577_s21 + $0x38] sm:$0xff]   ;;  %v2225_v61 = vld [vmem:[%s2577_s21 + $0x40] sm:$0xff]  }
  0x18   : > { %v2176_v53 = vunpack.c.l.bf16 %v2222_v52  ;;  %v2177_v54 = vunpack.c.h.bf16 %v2222_v52  ;;  %v2180_v56 = vunpack.c.l.bf16 %v2223_v55  ;;  %v2181_v57 = vunpack.c.h.bf16 %v2223_v55  ;;  %v2226_v0 = vld [vmem:[%s2577_s21 + $0x48] sm:$0xff]   ;;  %v2227_v3 = vld [vmem:[%s2577_s21 + $0x50] sm:$0xff]   ;;  %v2228_v6 = vld [vmem:[%s2577_s21 + $0x58] sm:$0xff]  }
  0x19   : > { %2372 = vmatpush1.bf16.msra.mxu0 %v2371_v18  ;;  %2380 = vmatpush3.bf16.msra.mxu1 %v2377_v28  ;;  %v2184_v59 = vunpack.c.l.bf16 %v2224_v58  ;;  %v2185_v60 = vunpack.c.h.bf16 %v2224_v58  ;;  %v2188_v62 = vunpack.c.l.bf16 %v2225_v61  ;;  %v2189_v63 = vunpack.c.h.bf16 %v2225_v61  ;;  %v838_v8 = vld [vmem:[%s3907_s3 + $0x60] sm:$0xff]  ;;  %v839_v9 = vld [vmem:[%s3907_s3 + $0x68] sm:$0xff]  ;;  %v840_v12 = vld [vmem:[%s3907_s3 + $0x70] sm:$0xff] }
  0x1a   : > { %2382 = vmatprep.subr.bf16.mxu1 %v2381_v32  ;;  %v2192_v1 = vunpack.c.l.bf16 %v2226_v0  ;;  %v2193_v2 = vunpack.c.h.bf16 %v2226_v0  ;;  %v2196_v4 = vunpack.c.l.bf16 %v2227_v3  ;;  %v2197_v5 = vunpack.c.h.bf16 %v2227_v3  ;;  %v841_v13 = vld [vmem:[%s3907_s3 + $0x78] sm:$0xff]  ;;  %v2229_v16 = vld [vmem:[%s2577_s21 + $0x60] sm:$0xff]   ;;  %v2230_v19 = vld [vmem:[%s2577_s21 + $0x68] sm:$0xff]  }
  0x1b   : > { %v2397_v10 = vpack.c.bf16 %v839_v9, %v838_v8  ;;  %v2200_v11 = vunpack.c.l.bf16 %v2228_v6  ;;  %v2401_v14 = vpack.c.bf16 %v841_v13, %v840_v12  ;;  %v2201_v15 = vunpack.c.h.bf16 %v2228_v6  ;;  %v2231_v22 = vld [vmem:[%s2577_s21 + $0x70] sm:$0xff]   ;;  %v1139_v36 = vld [vmem:[%s3909_s5 + $0x8] sm:$0xff]  ;;  %v1138_v38 = vld [vmem:[%s3909_s5] sm:$0xff] }
  0x1c   : > { %2116 = vmatmul.mubr.msk.f32.vlgmr.msra.gmra.mrb[0].mxu0 %vm408_vm0, %v2156_v20  ;;  %v2204_v17 = vunpack.c.l.bf16 %v2229_v16  ;;  %v2205_v18 = vunpack.c.h.bf16 %v2229_v16  ;;  %v2208_v20 = vunpack.c.l.bf16 %v2230_v19  ;;  %v2209_v21 = vunpack.c.h.bf16 %v2230_v19  ;;  %v1145_v42 = vld [vmem:[%s3909_s5 + $0x38] sm:$0xff]  ;;  %v1147_v49 = vld [vmem:[%s3909_s5 + $0x48] sm:$0xff]  ;;  %v1146_v55 = vld [vmem:[%s3909_s5 + $0x40] sm:$0xff] }
  0x1d   : > { %575 = vmatprep.mubr.f32.mxu0 %v2470_v7  ;;  %2384 = vmatpush3.bf16.msra.mxu1 %v2381_v32  ;;  %v2212_v23 = vunpack.c.l.bf16 %v2231_v22  ;;  %v2213_v24 = vunpack.c.h.bf16 %v2231_v22  ;;  %v398_v28 = vlaneseq  ;;  %v1157_v6 = vld [vmem:[%s3909_s5 + $0x98] sm:$0xff]  ;;  %v1154_v12 = vld [vmem:[%s3909_s5 + $0x80] sm:$0xff]  ;;  %v1156_v13 = vld [vmem:[%s3909_s5 + $0x90] sm:$0xff] }
  0x1e   : > { %2386 = vmatprep.subr.bf16.mxu1 %v2385_v37  ;;  %v1159_v16 = vld [vmem:[%s3909_s5 + $0xa8] sm:$0xff]  ;;  %v1158_v22 = vld [vmem:[%s3909_s5 + $0xa0] sm:$0xff] }
  0x1f   : > { %v2707_v29 = vshrl.u32 %v398_v28, 7 }
  0x20   : > { %2117 = vmatmul.mubr.msk.f32.gmra.mrb[2].mxu0 %vm408_vm0, %v2157_v25  ;;  %v2232_v25 = vld [vmem:[%s2577_s21 + $0x78] sm:$0xff]  }
  0x21   : > { %581 = vmatprep.mubr.f32.mxu0 %v2470_v7  ;;  %2388 = vmatpush3.bf16.msra.mxu1 %v2385_v37  ;;  %v2216_v26 = vunpack.c.l.bf16 %v2232_v25  ;;  %v2217_v27 = vunpack.c.h.bf16 %v2232_v25  ;;  %v404_v30 = vsub.s32 1, %v2707_v29  ;;  %v1141_v37 = vld [vmem:[%s3909_s5 + $0x18] sm:$0xff] }
  0x22   : > { %2390 = vmatprep.subr.bf16.mxu1 %v2389_v41  ;;  %v2405_v39 = vpack.c.bf16 %v1141_v37, %v1139_v36 }
  0x24   : > { %2118 = vmatmul.mubr.msk.f32.gmra.mrb[4].mxu0 %vm408_vm0, %v2160_v31  ;;  %v2713_v31 = vld [vmem:[%s3906_s2] sm:$0x3]  ;;  %2406 = vmatprep.subr.bf16.mxu0 %v2405_v39 }
  0x25   : > { %587 = vmatprep.mubr.f32.mxu0 %v2470_v7  ;;  %2392 = vmatpush3.bf16.msra.mxu1 %v2389_v41  ;;  %v2718_v32 = vrot.slane %v2713_v31, %v404_v30  ;;  %v1143_v41 = vld [vmem:[%s3909_s5 + $0x28] sm:$0xff] }
  0x26   : > { %2394 = vmatprep.subr.bf16.mxu1 %v2393_v46 }
  0x28   : > { %2119 = vmatmul.mubr.msk.f32.gmra.mrb[6].mxu0 %vm408_vm0, %v2161_v35 }
  0x29   : > { %593 = vmatprep.mubr.f32.mxu0 %v2470_v7  ;;  %2396 = vmatpush3.bf16.msra.mxu1 %v2393_v46  ;;  %v2409_v46 = vpack.c.bf16 %v1145_v42, %v1143_v41 }
  0x2a   : > { %2398 = vmatprep.subr.bf16.mxu1 %v2397_v10 }
  0x2c   : > { %2120 = vmatmul.mubr.msk.f32.gmra.mrb[8].mxu0 %vm408_vm0, %v2164_v40  ;;  %v1140_v40 = vld [vmem:[%s3909_s5 + $0x10] sm:$0xff] }
  0x2d   : > { %599 = vmatprep.mubr.f32.mxu0 %v2470_v7  ;;  %2400 = vmatpush3.bf16.msra.mxu1 %v2397_v10  ;;  %v2407_v45 = vpack.c.bf16 %v1140_v40, %v1138_v38 }
  0x2e   : > { %2402 = vmatprep.subr.bf16.mxu1 %v2401_v14 }
  0x2f   : > { %2408 = vmatpush1.bf16.msra.mxu0 %v2407_v45 }
  0x30   : > { %2121 = vmatmul.mubr.msk.f32.gmra.mrb[10].mxu0 %vm408_vm0, %v2165_v44  ;;  %2410 = vmatprep.subr.bf16.mxu0 %v2409_v46 }
  0x31   : > { %605 = vmatprep.mubr.f32.mxu0 %v2470_v7  ;;  %2404 = vmatpush3.bf16.msra.mxu1 %v2401_v14 }
  0x32   : > { %2437 = vmatprep.subr.bf16.mxu1 %v2405_v39 }
  0x34   : > { %2122 = vmatmul.mubr.msk.f32.gmra.mrb[12].mxu0 %vm408_vm0, %v2168_v47  ;;  %v1142_v47 = vld [vmem:[%s3909_s5 + $0x20] sm:$0xff] }
  0x35   : > { %611 = vmatprep.mubr.f32.mxu0 %v2470_v7 }
  0x38   : > { %2123 = vmatmul.mubr.msk.f32.gmra.mrb[14].mxu0 %vm408_vm0, %v2169_v48  ;;  %v1144_v48 = vld [vmem:[%s3909_s5 + $0x30] sm:$0xff] }
  0x39   : > { %617 = vmatprep.mubr.f32.mxu0 %v2470_v7 }
  0x3c   : > { %2124 = vmatmul.mubr.msk.f32.gmra.mrb[16].mxu0 %vm408_vm0, %v2172_v50 }
  0x3d   : > { %623 = vmatprep.mubr.f32.mxu0 %v2470_v7 }
  0x40   : > { %2125 = vmatmul.mubr.msk.f32.gmra.mrb[18].mxu0 %vm408_vm0, %v2173_v51  ;;  %v1149_v51 = vld [vmem:[%s3909_s5 + $0x58] sm:$0xff] }
  0x41   : > { %629 = vmatprep.mubr.f32.mxu0 %v2470_v7 }
  0x44   : > { %2126 = vmatmul.mubr.msk.f32.gmra.mrb[20].mxu0 %vm408_vm0, %v2176_v53  ;;  %v2411_v53 = vpack.c.bf16 %v1144_v48, %v1142_v47 }
  0x45   : > { %635 = vmatprep.mubr.f32.mxu0 %v2470_v7 }
  0x46   : > { %2412 = vmatpush1.bf16.msra.mxu0 %v2411_v53 }
  0x48   : > { %2127 = vmatmul.mubr.msk.f32.gmra.mrb[22].mxu0 %vm408_vm0, %v2177_v54  ;;  %v2413_v54 = vpack.c.bf16 %v1149_v51, %v1147_v49 }
  0x49   : > { %641 = vmatprep.mubr.f32.mxu0 %v2470_v7 }
  0x4a   : > { %2414 = vmatprep.subr.bf16.mxu0 %v2413_v54 }
  0x4c   : > { %2128 = vmatmul.mubr.msk.f32.gmra.mrb[24].mxu0 %vm408_vm0, %v2180_v56  ;;  %v1148_v56 = vld [vmem:[%s3909_s5 + $0x50] sm:$0xff] }
  0x4d   : > { %647 = vmatprep.mubr.f32.mxu0 %v2470_v7 }
  0x50   : > { %2129 = vmatmul.mubr.msk.f32.gmra.mrb[26].mxu0 %vm408_vm0, %v2181_v57 }
  0x51   : > { %653 = vmatprep.mubr.f32.mxu0 %v2470_v7 }
  0x54   : > { %2130 = vmatmul.mubr.msk.f32.gmra.mrb[28].mxu0 %vm408_vm0, %v2184_v59  ;;  %v1151_v59 = vld [vmem:[%s3909_s5 + $0x68] sm:$0xff] }
  0x55   : > { %659 = vmatprep.mubr.f32.mxu0 %v2470_v7 }
  0x58   : > { %2131 = vmatmul.mubr.msk.f32.gmra.mrb[30].mxu0 %vm408_vm0, %v2185_v60  ;;  %v1153_v60 = vld [vmem:[%s3909_s5 + $0x78] sm:$0xff] }
  0x59   : > { %665 = vmatprep.mubr.f32.mxu0 %v2470_v7  ;;  %v2417_v0 = vpack.c.bf16 %v1153_v60, %v1151_v59 }
  0x5c   : > { %2132 = vmatmul.mubr.msk.f32.gmra.mrb[32].mxu0 %vm408_vm0, %v2188_v62 }
  0x5d   : > { %671 = vmatprep.mubr.f32.mxu0 %v2470_v7 }
  0x60   : > { %2133 = vmatmul.mubr.msk.f32.gmra.mrb[34].mxu0 %vm408_vm0, %v2189_v63  ;;  %v2415_v63 = vpack.c.bf16 %v1148_v56, %v1146_v55 }
  0x61   : > { %677 = vmatprep.mubr.f32.mxu0 %v2470_v7 }
  0x62   : > { %2416 = vmatpush1.bf16.msra.mxu0 %v2415_v63 }
  0x63   : > { %2418 = vmatprep.subr.bf16.mxu0 %v2417_v0 }
  0x64   : > { %2134 = vmatmul.mubr.msk.f32.gmra.mrb[36].mxu0 %vm408_vm0, %v2192_v1  ;;  %v1150_v1 = vld [vmem:[%s3909_s5 + $0x60] sm:$0xff] }
  0x65   : > { %683 = vmatprep.mubr.f32.mxu0 %v2470_v7 }
  0x68   : > { %2135 = vmatmul.mubr.msk.f32.gmra.mrb[38].mxu0 %vm408_vm0, %v2193_v2  ;;  %v1152_v2 = vld [vmem:[%s3909_s5 + $0x70] sm:$0xff] }
  0x69   : > { %689 = vmatprep.mubr.f32.mxu0 %v2470_v7  ;;  %v2419_v10 = vpack.c.bf16 %v1152_v2, %v1150_v1 }
  0x6b   : > { %2420 = vmatpush1.bf16.msra.mxu0 %v2419_v10 }
  0x6c   : > { %2136 = vmatmul.mubr.msk.f32.gmra.mrb[40].mxu0 %vm408_vm0, %v2196_v4 }
  0x6d   : > { %695 = vmatprep.mubr.f32.mxu0 %v2470_v7 }
  0x70   : > { %2137 = vmatmul.mubr.msk.f32.gmra.mrb[42].mxu0 %vm408_vm0, %v2197_v5  ;;  %v1155_v5 = vld [vmem:[%s3909_s5 + $0x88] sm:$0xff] }
  0x71   : > { %701 = vmatprep.mubr.f32.mxu0 %v2470_v7 }
  0x74   : > { %2138 = vmatmul.mubr.msk.f32.gmra.mrb[44].mxu0 %vm408_vm0, %v2200_v11  ;;  %v2421_v11 = vpack.c.bf16 %v1157_v6, %v1155_v5 }
  0x75   : > { %707 = vmatprep.mubr.f32.mxu0 %v2470_v7 }
  0x76   : > { %2422 = vmatprep.subr.bf16.mxu0 %v2421_v11 }
  0x78   : > { %2139 = vmatmul.mubr.msk.f32.gmra.mrb[46].mxu0 %vm408_vm0, %v2201_v15 }
  0x79   : > { %713 = vmatprep.mubr.f32.mxu0 %v2470_v7 }
  0x7c   : > { %2140 = vmatmul.mubr.msk.f32.gmra.mrb[48].mxu0 %vm408_vm0, %v2204_v17  ;;  %v1161_v17 = vld [vmem:[%s3909_s5 + $0xb8] sm:$0xff] }
  0x7d   : > { %719 = vmatprep.mubr.f32.mxu0 %v2470_v7 }
  0x80   : > { %2141 = vmatmul.mubr.msk.f32.gmra.mrb[50].mxu0 %vm408_vm0, %v2205_v18 }
  0x81   : > { %725 = vmatprep.mubr.f32.mxu0 %v2470_v7 }
  0x84   : > { %2142 = vmatmul.mubr.msk.f32.gmra.mrb[52].mxu0 %vm408_vm0, %v2208_v20  ;;  %v2423_v20 = vpack.c.bf16 %v1156_v13, %v1154_v12 }
  0x85   : > { %731 = vmatprep.mubr.f32.mxu0 %v2470_v7 }
  0x86   : > { %2424 = vmatpush1.bf16.msra.mxu0 %v2423_v20 }
  0x88   : > { %2143 = vmatmul.mubr.msk.f32.gmra.mrb[54].mxu0 %vm408_vm0, %v2209_v21  ;;  %v2425_v21 = vpack.c.bf16 %v1161_v17, %v1159_v16 }
  0x89   : > { %737 = vmatprep.mubr.f32.mxu0 %v2470_v7 }
  0x8a   : > { %2426 = vmatprep.subr.bf16.mxu0 %v2425_v21 }
  0x8c   : > { %2144 = vmatmul.mubr.msk.f32.gmra.mrb[56].mxu0 %vm408_vm0, %v2212_v23  ;;  %v1160_v23 = vld [vmem:[%s3909_s5 + $0xb0] sm:$0xff] }
  0x8d   : > { %743 = vmatprep.mubr.f32.mxu0 %v2470_v7  ;;  %v2427_v28 = vpack.c.bf16 %v1160_v23, %v1158_v22 }
  0x8f   : > { %2428 = vmatpush1.bf16.msra.mxu0 %v2427_v28 }
  0x90   : > { %2145 = vmatmul.mubr.msk.f32.gmra.mrb[58].mxu0 %vm408_vm0, %v2213_v24 }
  0x91   : > { %749 = vmatprep.mubr.f32.mxu0 %v2470_v7 }
  0x94   : > { %2146 = vmatmul.mubr.msk.f32.gmra.mrb[60].mxu0 %vm408_vm0, %v2216_v26 }
  0x95   : > { %755 = vmatprep.mubr.f32.mxu0 %v2470_v7 }
  0x98   : > { %2147 = vmatmul.mubr.msk.f32.gmra.mrb[62].mxu0 %vm408_vm0, %v2217_v27 }
  0x99   : > { %1246 = vmatprep.mubr.f32.mxu0 %v2470_v7 }
  0xef   : > { %v2720_v33 = vpop.f32.mrb[0].mxu0 }
  0xf0   : > { %v573_v34 = vpop.f32.mrb[1].mxu0 }
  0xf1   : > { %v574_v35 = vadd.f32 %v573_v34, %v2718_v32 }
  0xf3   : > { %v2741_v43 = vpop.f32.mrb[2].mxu0  ;;  %v763_v44 = vmax.f32 %v574_v35, 0.0 }
  0xf4   : > { %v579_v50 = vpop.f32.mrb[3].mxu0 }
  0xf5   : > { %v580_v52 = vadd.f32 %v579_v50, %v2718_v32  ;;  %2313 = vmatprep.mubr.f32.mxu1 %v763_v44 }
  0xf7   : > { %v765_v57 = vmax.f32 %v580_v52, 0.0  ;;  %v2762_v58 = vpop.f32.mrb[4].mxu0 }
  0xf8   : > { %v585_v61 = vpop.f32.mrb[5].mxu0 }
  0xf9   : > { %v586_v62 = vadd.f32 %v585_v61, %v2718_v32  ;;  %2314 = vmatmul.mubr.f32.vlgmr.msra.gmra.mrb[0].mxu1 %v765_v57 }
  0xfa   : > { %2445 = vmatpush1.bf16.msra.mxu1 %v2407_v45 }
  0xfb   : > { %v767_v3 = vmax.f32 %v586_v62, 0.0  ;;  %v2777_v4 = vpop.f32.mrb[6].mxu0  ;;  %2438 = vmatprep.subr.bf16.mxu1 %v2409_v46 }
  0xfc   : > { %v591_v8 = vpop.f32.mrb[7].mxu0 }
  0xfd   : > { %v592_v9 = vadd.f32 %v591_v8, %v2718_v32  ;;  %2316 = vmatprep.mubr.f32.mxu1 %v767_v3 }
  0xfe   : > { %2446 = vmatpush1.bf16.msra.mxu1 %v2411_v53 }
  0xff   : > { %v769_v14 = vmax.f32 %v592_v9, 0.0  ;;  %v2792_v15 = vpop.f32.mrb[8].mxu0  ;;  %2439 = vmatprep.subr.bf16.mxu1 %v2413_v54 }
 0x100   : > { %v597_v18 = vpop.f32.mrb[9].mxu0 }
 0x101   : > { %v598_v19 = vadd.f32 %v597_v18, %v2718_v32  ;;  %2317 = vmatmul.mubr.f32.gmra.mrb[2].mxu1 %v769_v14 }
 0x102   : > { %2447 = vmatpush1.bf16.msra.mxu1 %v2415_v63 }
 0x103   : > { %v771_v24 = vmax.f32 %v598_v19, 0.0  ;;  %v2807_v25 = vpop.f32.mrb[10].mxu0  ;;  %2440 = vmatprep.subr.bf16.mxu1 %v2417_v0 }
 0x104   : > { %v603_v26 = vpop.f32.mrb[11].mxu0 }
 0x105   : > { %v604_v27 = vadd.f32 %v603_v26, %v2718_v32  ;;  %2319 = vmatprep.mubr.f32.mxu1 %v771_v24 }
 0x106   : > { %2448 = vmatpush1.bf16.msra.mxu1 %v2419_v10 }
 0x107   : > { %v773_v34 = vmax.f32 %v604_v27, 0.0  ;;  %v2810_v35 = vpop.f32.mrb[12].mxu0  ;;  %2441 = vmatprep.subr.bf16.mxu1 %v2421_v11 }
 0x108   : > { %v609_v36 = vpop.f32.mrb[13].mxu0 }
 0x109   : > { %v610_v37 = vadd.f32 %v609_v36, %v2718_v32  ;;  %2320 = vmatmul.mubr.f32.gmra.mrb[4].mxu1 %v773_v34 }
 0x10a   : > { %2449 = vmatpush1.bf16.msra.mxu1 %v2423_v20 }
 0x10b   : > { %v775_v38 = vmax.f32 %v610_v37, 0.0  ;;  %v2813_v39 = vpop.f32.mrb[14].mxu0  ;;  %2442 = vmatprep.subr.bf16.mxu1 %v2425_v21 }
 0x10c   : > { %v615_v40 = vpop.f32.mrb[15].mxu0 }
 0x10d   : > { %v616_v41 = vadd.f32 %v615_v40, %v2718_v32  ;;  %2322 = vmatprep.mubr.f32.mxu1 %v775_v38 }
 0x10e   : > { %2450 = vmatpush1.bf16.msra.mxu1 %v2427_v28 }
 0x10f   : > { %v777_v42 = vmax.f32 %v616_v41, 0.0  ;;  %v2816_v44 = vpop.f32.mrb[16].mxu0 }
 0x110   : > { %v621_v45 = vpop.f32.mrb[17].mxu0 }
 0x111   : > { %v622_v46 = vadd.f32 %v621_v45, %v2718_v32  ;;  %2323 = vmatmul.mubr.f32.gmra.mrb[6].mxu1 %v777_v42 }
 0x113   : > { %v779_v47 = vmax.f32 %v622_v46, 0.0  ;;  %v2819_v48 = vpop.f32.mrb[18].mxu0 }
 0x114   : > { %v627_v49 = vpop.f32.mrb[19].mxu0 }
 0x115   : > { %v628_v50 = vadd.f32 %v627_v49, %v2718_v32  ;;  %2325 = vmatprep.mubr.f32.mxu1 %v779_v47 }
 0x117   : > { %v781_v51 = vmax.f32 %v628_v50, 0.0  ;;  %v2822_v52 = vpop.f32.mrb[20].mxu0 }
 0x118   : > { %v633_v53 = vpop.f32.mrb[21].mxu0 }
 0x119   : > { %v634_v54 = vadd.f32 %v633_v53, %v2718_v32  ;;  %2326 = vmatmul.mubr.f32.gmra.mrb[8].mxu1 %v781_v51 }
 0x11b   : > { %v783_v55 = vmax.f32 %v634_v54, 0.0  ;;  %v2825_v56 = vpop.f32.mrb[22].mxu0 }
 0x11c   : > { %v639_v57 = vpop.f32.mrb[23].mxu0 }
 0x11d   : > { %v640_v59 = vadd.f32 %v639_v57, %v2718_v32  ;;  %2328 = vmatprep.mubr.f32.mxu1 %v783_v55  ;;  %v1163_v55 = vld [vmem:[%s3909_s5 + $0xc8] sm:$0xff]  ;;  %v1165_v57 = vld [vmem:[%s3909_s5 + $0xd8] sm:$0xff] }
 0x11f   : > { %v785_v60 = vmax.f32 %v640_v59, 0.0  ;;  %v2828_v61 = vpop.f32.mrb[24].mxu0  ;;  %v2429_v59 = vpack.c.bf16 %v1165_v57, %v1163_v55 }
 0x120   : > { %v645_v62 = vpop.f32.mrb[25].mxu0 }
 0x121   : > { %v646_v63 = vadd.f32 %v645_v62, %v2718_v32  ;;  %2329 = vmatmul.mubr.f32.gmra.mrb[10].mxu1 %v785_v60  ;;  %v1162_v60 = vld [vmem:[%s3909_s5 + $0xc0] sm:$0xff]  ;;  %v1164_v62 = vld [vmem:[%s3909_s5 + $0xd0] sm:$0xff]  ;;  %2430 = vmatprep.subr.bf16.mxu0 %v2429_v59 }
 0x122   : > { %2443 = vmatprep.subr.bf16.mxu1 %v2429_v59 }
 0x123   : > { %v787_v0 = vmax.f32 %v646_v63, 0.0  ;;  %v2831_v1 = vpop.f32.mrb[26].mxu0 }
 0x124   : > { %v651_v2 = vpop.f32.mrb[27].mxu0 }
 0x125   : > { %v652_v3 = vadd.f32 %v651_v2, %v2718_v32  ;;  %2331 = vmatprep.mubr.f32.mxu1 %v787_v0  ;;  %v2431_v2 = vpack.c.bf16 %v1164_v62, %v1162_v60 }
 0x127   : > { %v789_v5 = vmax.f32 %v652_v3, 0.0  ;;  %v2834_v6 = vpop.f32.mrb[28].mxu0  ;;  %2432 = vmatpush1.bf16.msra.mxu0 %v2431_v2  ;;  %2451 = vmatpush1.bf16.msra.mxu1 %v2431_v2 }
 0x128   : > { %v657_v8 = vpop.f32.mrb[29].mxu0 }
 0x129   : > { %v658_v9 = vadd.f32 %v657_v8, %v2718_v32  ;;  %2332 = vmatmul.mubr.f32.gmra.mrb[12].mxu1 %v789_v5  ;;  %v1167_v8 = vld [vmem:[%s3909_s5 + $0xe8] sm:$0xff] }
 0x12b   : > { %v791_v10 = vmax.f32 %v658_v9, 0.0  ;;  %v2837_v11 = vpop.f32.mrb[30].mxu0  ;;  %v1169_v9 = vld [vmem:[%s3909_s5 + $0xf8] sm:$0xff] }
 0x12c   : > { %v663_v12 = vpop.f32.mrb[31].mxu0 }
 0x12d   : > { %v664_v13 = vadd.f32 %v663_v12, %v2718_v32  ;;  %2334 = vmatprep.mubr.f32.mxu1 %v791_v10  ;;  %v2433_v10 = vpack.c.bf16 %v1169_v9, %v1167_v8  ;;  %v1166_v12 = vld [vmem:[%s3909_s5 + $0xe0] sm:$0xff] }
 0x12f   : > { %v793_v14 = vmax.f32 %v664_v13, 0.0  ;;  %v2840_v16 = vpop.f32.mrb[32].mxu0  ;;  %v1168_v13 = vld [vmem:[%s3909_s5 + $0xf0] sm:$0xff]  ;;  %2434 = vmatprep.subr.bf16.mxu0 %v2433_v10  ;;  %2444 = vmatprep.subr.bf16.mxu1 %v2433_v10 }
 0x130   : > { %v669_v17 = vpop.f32.mrb[33].mxu0 }
 0x131   : > { %v670_v18 = vadd.f32 %v669_v17, %v2718_v32  ;;  %2335 = vmatmul.mubr.f32.gmra.mrb[14].mxu1 %v793_v14 }
 0x133   : > { %v795_v19 = vmax.f32 %v670_v18, 0.0  ;;  %v2843_v20 = vpop.f32.mrb[34].mxu0  ;;  %v2435_v18 = vpack.c.bf16 %v1168_v13, %v1166_v12  ;;  %v400_v13 = vsub.s32 0, %v2707_v29 }
 0x134   : > { %v675_v21 = vpop.f32.mrb[35].mxu0 }
 0x135   : > { %v676_v22 = vadd.f32 %v675_v21, %v2718_v32  ;;  %2337 = vmatprep.mubr.f32.mxu1 %v795_v19  ;;  %2436 = vmatpush1.bf16.msra.mxu0 %v2435_v18 }
 0x136   : > { %2452 = vmatpush1.bf16.msra.mxu1 %v2435_v18  ;;  %v2922_v18 = vld [vmem:[%s3908_s4] ss:$0 sm:$0xff] }
 0x137   : > { %v797_v23 = vmax.f32 %v676_v22, 0.0  ;;  %v2846_v24 = vpop.f32.mrb[36].mxu0 }
 0x138   : > { %v681_v26 = vpop.f32.mrb[37].mxu0 }
 0x139   : > { %v682_v27 = vadd.f32 %v681_v26, %v2718_v32  ;;  %2338 = vmatmul.mubr.f32.gmra.mrb[16].mxu1 %v797_v23 }
 0x13b   : > { %v799_v28 = vmax.f32 %v682_v27, 0.0  ;;  %v2849_v34 = vpop.f32.mrb[38].mxu0 }
 0x13c   : > { %v687_v36 = vpop.f32.mrb[39].mxu0 }
 0x13d   : > { %v688_v37 = vadd.f32 %v687_v36, %v2718_v32  ;;  %2340 = vmatprep.mubr.f32.mxu1 %v799_v28 }
 0x13f   : > { %v801_v38 = vmax.f32 %v688_v37, 0.0  ;;  %v2852_v40 = vpop.f32.mrb[40].mxu0 }
 0x140   : > { %v693_v41 = vpop.f32.mrb[41].mxu0 }
 0x141   : > { %v694_v42 = vadd.f32 %v693_v41, %v2718_v32  ;;  %2341 = vmatmul.mubr.f32.gmra.mrb[18].mxu1 %v801_v38 }
 0x143   : > { %v803_v45 = vmax.f32 %v694_v42, 0.0  ;;  %v2855_v46 = vpop.f32.mrb[42].mxu0 }
 0x144   : > { %v699_v47 = vpop.f32.mrb[43].mxu0 }
 0x145   : > { %v700_v49 = vadd.f32 %v699_v47, %v2718_v32  ;;  %2343 = vmatprep.mubr.f32.mxu1 %v803_v45 }
 0x147   : > { %v805_v50 = vmax.f32 %v700_v49, 0.0  ;;  %v2858_v51 = vpop.f32.mrb[44].mxu0 }
 0x148   : > { %v705_v53 = vpop.f32.mrb[45].mxu0 }
 0x149   : > { %v706_v54 = vadd.f32 %v705_v53, %v2718_v32  ;;  %2344 = vmatmul.mubr.f32.gmra.mrb[20].mxu1 %v805_v50 }
 0x14b   : > { %v807_v63 = vmax.f32 %v706_v54, 0.0  ;;  %v2873_v0 = vpop.f32.mrb[46].mxu0 }
 0x14c   : > { %v711_v3 = vpop.f32.mrb[47].mxu0 }
 0x14d   : > { %v712_v5 = vadd.f32 %v711_v3, %v2718_v32  ;;  %2346 = vmatprep.mubr.f32.mxu1 %v807_v63 }
 0x14f   : > { %v809_v14 = vmax.f32 %v712_v5, 0.0  ;;  %v2888_v17 = vpop.f32.mrb[48].mxu0 }
 0x150   : > { %v717_v19 = vpop.f32.mrb[49].mxu0 }
 0x151   : > { %v718_v21 = vadd.f32 %v717_v19, %v2718_v32  ;;  %2347 = vmatmul.mubr.f32.gmra.mrb[22].mxu1 %v809_v14  ;;  %v2917_v14 = vrot.slane %v2713_v31, %v400_v13 }
 0x153   : > { %v811_v22 = vmax.f32 %v718_v21, 0.0  ;;  %v2891_v23 = vpop.f32.mrb[50].mxu0  ;;  %v572_v19 = vadd.f32 %v2720_v33, %v2917_v14  ;;  %v584_v33 = vadd.f32 %v2762_v58, %v2917_v14 }
 0x154   : > { %v723_v26 = vpop.f32.mrb[51].mxu0 }
 0x155   : > { %v724_v27 = vadd.f32 %v723_v26, %v2718_v32  ;;  %2349 = vmatprep.mubr.f32.mxu1 %v811_v22 }
 0x157   : > { %v813_v28 = vmax.f32 %v724_v27, 0.0  ;;  %v2894_v36 = vpop.f32.mrb[52].mxu0 }
 0x158   : > { %v729_v37 = vpop.f32.mrb[53].mxu0 }
 0x159   : > { %v730_v38 = vadd.f32 %v729_v37, %v2718_v32  ;;  %2350 = vmatmul.mubr.f32.gmra.mrb[24].mxu1 %v813_v28  ;;  %v762_v37 = vmax.f32 %v572_v19, 0.0 }
 0x15b   : > { %v815_v41 = vmax.f32 %v730_v38, 0.0  ;;  %v2897_v42 = vpop.f32.mrb[54].mxu0 }
 0x15c   : > { %v735_v45 = vpop.f32.mrb[55].mxu0 }
 0x15d   : > { %v736_v47 = vadd.f32 %v735_v45, %v2718_v32  ;;  %2352 = vmatprep.mubr.f32.mxu1 %v815_v41 }
 0x15f   : > { %v817_v49 = vmax.f32 %v736_v47, 0.0  ;;  %v2900_v50 = vpop.f32.mrb[56].mxu0 }
 0x160   : > { %v741_v53 = vpop.f32.mrb[57].mxu0 }
 0x161   : > { %v742_v54 = vadd.f32 %v741_v53, %v2718_v32  ;;  %2353 = vmatmul.mubr.f32.gmra.mrb[26].mxu1 %v817_v49 }
 0x163   : > { %v819_v55 = vmax.f32 %v742_v54, 0.0  ;;  %v2903_v57 = vpop.f32.mrb[58].mxu0 }
 0x164   : > { %v747_v59 = vpop.f32.mrb[59].mxu0 }
 0x165   : > { %v748_v60 = vadd.f32 %v747_v59, %v2718_v32  ;;  %2355 = vmatprep.mubr.f32.mxu1 %v819_v55 }
 0x167   : > { %v821_v62 = vmax.f32 %v748_v60, 0.0  ;;  %v2906_v63 = vpop.f32.mrb[60].mxu0  ;;  %v766_v60 = vmax.f32 %v584_v33, 0.0 }
 0x168   : > { %v753_v2 = vpop.f32.mrb[61].mxu0 }
 0x169   : > { %v754_v3 = vadd.f32 %v753_v2, %v2718_v32  ;;  %2356 = vmatmul.mubr.f32.gmra.mrb[28].mxu1 %v821_v62  ;;  %v602_v2 = vadd.f32 %v2807_v25, %v2917_v14 }
 0x16b   : > { %v823_v5 = vmax.f32 %v754_v3, 0.0  ;;  %v2909_v8 = vpop.f32.mrb[62].mxu0  ;;  %v596_v3 = vadd.f32 %v2792_v15, %v2917_v14 }
 0x16c   : > { %v759_v9 = vpop.f32.mrb[63].mxu0 }
 0x16d   : > { %v760_v10 = vadd.f32 %v759_v9, %v2718_v32  ;;  %2358 = vmatprep.mubr.f32.mxu1 %v823_v5  ;;  %v578_v32 = vadd.f32 %v2741_v43, %v2917_v14  ;;  %v590_v43 = vadd.f32 %v2777_v4, %v2917_v14 }
 0x16f   : > { %v825_v12 = vmax.f32 %v760_v10, 0.0  ;;  %v764_v28 = vmax.f32 %v578_v32, 0.0  ;;  %v768_v55 = vmax.f32 %v590_v43, 0.0  ;;  %v772_v32 = vmax.f32 %v602_v2, 0.0 }
 0x171   : > { %2359 = vmatmul.mubr.f32.gmra.mrb[30].mxu1 %v825_v12 }
 0x172   : > { %1306 = vmatprep.mubr.f32.mxu1 %v2470_v7 }
 0x1cc   : > { %v2315_v21 = vpop.f32.mrb[0].mxu1 }
 0x1cd   : > { %v921_v22 = vadd.f32 %v2315_v21, %v2922_v18  ;;  %v915_v26 = vpop.f32.mrb[1].mxu1  ;;  %v770_v21 = vmax.f32 %v596_v3, 0.0 }
 0x1ce   : > { %v916_v27 = vadd.f32 %v2922_v18, %v915_v26  ;;  %v614_v26 = vadd.f32 %v2813_v39, %v2917_v14 }
 0x1cf   : > { %v1075_v31 = vmax.f32 %v921_v22, 0.0 }
 0x1d0   : > { %v1074_v38 = vmax.f32 %v916_v27, 0.0  ;;  %v608_v27 = vadd.f32 %v2810_v35, %v2917_v14  ;;  %v776_v43 = vmax.f32 %v614_v26, 0.0 }
 0x1d1   : > { %v2930_v41 = vsub.f32 %v1075_v31, %v764_v28 }
 0x1d2   : > { %v2932_v45 = vsub.f32 %v1074_v38, %v762_v37 }
 0x1d4   : > { %v2318_v47 = vpop.f32.mrb[2].mxu1  ;;  %1247 = vmatmul.mubr.f32.vlgmr.msra.gmra.mrb[64].mxu0 %v2932_v45 }
 0x1d5   : > { %v931_v49 = vadd.f32 %v2318_v47, %v2922_v18  ;;  %v925_v53 = vpop.f32.mrb[3].mxu1  ;;  %1252 = vmatprep.mubr.f32.mxu0 %v2470_v7  ;;  %v774_v47 = vmax.f32 %v608_v27, 0.0 }
 0x1d6   : > { %v926_v54 = vadd.f32 %v2922_v18, %v925_v53  ;;  %v626_v53 = vadd.f32 %v2819_v48, %v2917_v14 }
 0x1d7   : > { %v1077_v59 = vmax.f32 %v931_v49, 0.0 }
 0x1d8   : > { %v1076_v62 = vmax.f32 %v926_v54, 0.0  ;;  %1253 = vmatmul.mubr.f32.gmra.mrb[66].mxu0 %v2930_v41  ;;  %v620_v54 = vadd.f32 %v2816_v44, %v2917_v14  ;;  %v780_v2 = vmax.f32 %v626_v53, 0.0  ;;  %v644_v53 = vadd.f32 %v2828_v61, %v2917_v14 }
 0x1d9   : > { %v2943_v4 = vsub.f32 %v1077_v59, %v768_v55  ;;  %1258 = vmatprep.mubr.f32.mxu0 %v2470_v7 }
 0x1da   : > { %v2946_v58 = vsub.f32 %v1076_v62, %v766_v60  ;;  %v786_v61 = vmax.f32 %v644_v53, 0.0 }
 0x1dc   : > { %v2321_v5 = vpop.f32.mrb[4].mxu1  ;;  %1259 = vmatmul.mubr.f32.gmra.mrb[68].mxu0 %v2946_v58 }
 0x1dd   : > { %v941_v9 = vadd.f32 %v2321_v5, %v2922_v18  ;;  %v935_v10 = vpop.f32.mrb[5].mxu1  ;;  %1264 = vmatprep.mubr.f32.mxu0 %v2470_v7  ;;  %v778_v5 = vmax.f32 %v620_v54, 0.0  ;;  %v1507_v54 = vmul.f32 %v2943_v4, %v2943_v4 }
 0x1de   : > { %v936_v12 = vadd.f32 %v2922_v18, %v935_v10  ;;  %v638_v10 = vadd.f32 %v2825_v56, %v2917_v14  ;;  %v1506_v56 = vmul.f32 %v2946_v58, %v2946_v58 }
 0x1df   : > { %v1079_v19 = vmax.f32 %v941_v9, 0.0 }
 0x1e0   : > { %v1078_v22 = vmax.f32 %v936_v12, 0.0  ;;  %1265 = vmatmul.mubr.f32.gmra.mrb[70].mxu0 %v2943_v4  ;;  %v632_v12 = vadd.f32 %v2822_v52, %v2917_v14  ;;  %v784_v52 = vmax.f32 %v638_v10, 0.0 }
 0x1e1   : > { %v2957_v25 = vsub.f32 %v1079_v19, %v772_v32  ;;  %1270 = vmatprep.mubr.f32.mxu0 %v2470_v7  ;;  %v1505_v32 = vmul.f32 %v2930_v41, %v2930_v41  ;;  %v1504_v19 = vmul.f32 %v2932_v45, %v2932_v45 }
 0x1e2   : > { %v2960_v15 = vsub.f32 %v1078_v22, %v770_v21 }
 0x1e4   : > { %v2324_v28 = vpop.f32.mrb[6].mxu1  ;;  %1271 = vmatmul.mubr.f32.gmra.mrb[72].mxu0 %v2960_v15 }
 0x1e5   : > { %v951_v31 = vadd.f32 %v2324_v28, %v2922_v18  ;;  %v945_v37 = vpop.f32.mrb[7].mxu1  ;;  %1276 = vmatprep.mubr.f32.mxu0 %v2470_v7 }
 0x1e6   : > { %v946_v38 = vadd.f32 %v2922_v18, %v945_v37  ;;  %v1536_v37 = vadd.f32 %v1505_v32, %v1504_v19  ;;  %v1509_v32 = vmul.f32 %v2957_v25, %v2957_v25 }
 0x1e7   : > { %v1081_v33 = vmax.f32 %v951_v31, 0.0  ;;  %v782_v31 = vmax.f32 %v632_v12, 0.0 }
 0x1e8   : > { %v1080_v49 = vmax.f32 %v946_v38, 0.0  ;;  %1277 = vmatmul.mubr.f32.gmra.mrb[74].mxu0 %v2957_v25 }
 0x1e9   : > { %v2971_v39 = vsub.f32 %v1081_v33, %v776_v43  ;;  %1282 = vmatprep.mubr.f32.mxu0 %v2470_v7  ;;  %v1537_v33 = vadd.f32 %v1536_v37, %v1506_v56 }
 0x1ea   : > { %v2974_v35 = vsub.f32 %v1080_v49, %v774_v47  ;;  %v650_v49 = vadd.f32 %v2831_v1, %v2917_v14 }
 0x1ec   : > { %v2327_v55 = vpop.f32.mrb[8].mxu1  ;;  %1283 = vmatmul.mubr.f32.gmra.mrb[76].mxu0 %v2974_v35  ;;  %v1510_v19 = vmul.f32 %v2974_v35, %v2974_v35 }
 0x1ed   : > { %v961_v59 = vadd.f32 %v2327_v55, %v2922_v18  ;;  %v955_v60 = vpop.f32.mrb[9].mxu1  ;;  %1288 = vmatprep.mubr.f32.mxu0 %v2470_v7  ;;  %v1508_v55 = vmul.f32 %v2960_v15, %v2960_v15 }
 0x1ee   : > { %v956_v62 = vadd.f32 %v2922_v18, %v955_v60 }
 0x1ef   : > { %v1083_v3 = vmax.f32 %v961_v59, 0.0 }
 0x1f0   : > { %v1082_v9 = vmax.f32 %v956_v62, 0.0  ;;  %1289 = vmatmul.mubr.f32.gmra.mrb[78].mxu0 %v2971_v39 }
 0x1f1   : > { %v2985_v48 = vsub.f32 %v1083_v3, %v780_v2  ;;  %1294 = vmatprep.mubr.f32.mxu0 %v2470_v7  ;;  %v1538_v2 = vadd.f32 %v1537_v33, %v1507_v54  ;;  %v788_v3 = vmax.f32 %v650_v49, 0.0 }
 0x1f2   : > { %v2988_v44 = vsub.f32 %v1082_v9, %v778_v5 }
 0x1f3   : > { %v1539_v9 = vadd.f32 %v1538_v2, %v1508_v55 }
 0x1f4   : > { %v2330_v21 = vpop.f32.mrb[10].mxu1  ;;  %1295 = vmatmul.mubr.f32.gmra.mrb[80].mxu0 %v2988_v44 }
 0x1f5   : > { %v971_v22 = vadd.f32 %v2330_v21, %v2922_v18  ;;  %v965_v26 = vpop.f32.mrb[11].mxu1  ;;  %1300 = vmatprep.mubr.f32.mxu0 %v2470_v7  ;;  %v1540_v56 = vadd.f32 %v1539_v9, %v1509_v32 }
 0x1f6   : > { %v966_v27 = vadd.f32 %v2922_v18, %v965_v26  ;;  %v656_v26 = vadd.f32 %v2834_v6, %v2917_v14  ;;  %v1512_v6 = vmul.f32 %v2988_v44, %v2988_v44 }
 0x1f7   : > { %v1085_v28 = vmax.f32 %v971_v22, 0.0  ;;  %v662_v22 = vadd.f32 %v2837_v11, %v2917_v14  ;;  %v1511_v11 = vmul.f32 %v2971_v39, %v2971_v39 }
 0x1f8   : > { %v1084_v38 = vmax.f32 %v966_v27, 0.0  ;;  %1301 = vmatmul.mubr.f32.gmra.mrb[82].mxu0 %v2985_v48  ;;  %v790_v49 = vmax.f32 %v656_v26, 0.0 }
 0x1f9   : > { %v3005_v43 = vsub.f32 %v1085_v28, %v784_v52 }
 0x1fa   : > { %v3007_v47 = vsub.f32 %v1084_v38, %v782_v31  ;;  %v1541_v31 = vadd.f32 %v1540_v56, %v1510_v19  ;;  %v792_v38 = vmax.f32 %v662_v22, 0.0 }
 0x1fc   : > { %v2333_v59 = vpop.f32.mrb[12].mxu1  ;;  %1307 = vmatmul.mubr.f32.vlgmr.msra.gmra.mrb[32].mxu1 %v3007_v47  ;;  %v1542_v55 = vadd.f32 %v1541_v31, %v1511_v11  ;;  %v1514_v9 = vmul.f32 %v3007_v47, %v3007_v47  ;;  %v1515_v31 = vmul.f32 %v3005_v43, %v3005_v43 }
 0x1fd   : > { %v981_v60 = vadd.f32 %v2333_v59, %v2922_v18  ;;  %v975_v62 = vpop.f32.mrb[13].mxu1  ;;  %1312 = vmatprep.mubr.f32.mxu1 %v2470_v7 }
 0x1fe   : > { %v976_v1 = vadd.f32 %v2922_v18, %v975_v62  ;;  %v668_v62 = vadd.f32 %v2840_v16, %v2917_v14  ;;  %v1543_v2 = vadd.f32 %v1542_v55, %v1512_v6 }
 0x1ff   : > { %v1087_v5 = vmax.f32 %v981_v60, 0.0  ;;  %v674_v60 = vadd.f32 %v2843_v20, %v2917_v14 }
 0x200   : > { %v1086_v10 = vmax.f32 %v976_v1, 0.0  ;;  %1313 = vmatmul.mubr.f32.gmra.mrb[34].mxu1 %v3005_v43  ;;  %v794_v16 = vmax.f32 %v668_v62, 0.0 }
 0x201   : > { %v3022_v12 = vsub.f32 %v1087_v5, %v788_v3  ;;  %1318 = vmatprep.mubr.f32.mxu1 %v2470_v7 }
 0x202   : > { %v3029_v21 = vsub.f32 %v1086_v10, %v786_v61  ;;  %v1513_v61 = vmul.f32 %v2985_v48, %v2985_v48  ;;  %v796_v10 = vmax.f32 %v674_v60, 0.0 }
 0x204   : > { %v2336_v27 = vpop.f32.mrb[14].mxu1  ;;  %1319 = vmatmul.mubr.f32.gmra.mrb[36].mxu1 %v3029_v21  ;;  %v1544_v19 = vadd.f32 %v1543_v2, %v1513_v61  ;;  %v1517_v2 = vmul.f32 %v3022_v12, %v3022_v12  ;;  %v692_v61 = vadd.f32 %v2852_v40, %v2917_v14 }
 0x205   : > { %v991_v52 = vadd.f32 %v2336_v27, %v2922_v18  ;;  %v985_v28 = vpop.f32.mrb[15].mxu1  ;;  %1324 = vmatprep.mubr.f32.mxu1 %v2470_v7 }
 0x206   : > { %v986_v37 = vadd.f32 %v2922_v18, %v985_v28  ;;  %v1545_v56 = vadd.f32 %v1544_v19, %v1514_v9  ;;  %v680_v28 = vadd.f32 %v2846_v24, %v2917_v14 }
 0x207   : > { %v1089_v33 = vmax.f32 %v991_v52, 0.0  ;;  %v686_v52 = vadd.f32 %v2849_v34, %v2917_v14 }
 0x208   : > { %v1088_v53 = vmax.f32 %v986_v37, 0.0  ;;  %1325 = vmatmul.mubr.f32.gmra.mrb[38].mxu1 %v3022_v12  ;;  %v1516_v37 = vmul.f32 %v3029_v21, %v3029_v21  ;;  %v1546_v11 = vadd.f32 %v1545_v56, %v1515_v31  ;;  %v798_v24 = vmax.f32 %v680_v28, 0.0 }
 0x209   : > { %v3044_v54 = vsub.f32 %v1089_v33, %v792_v38  ;;  %1330 = vmatprep.mubr.f32.mxu1 %v2470_v7  ;;  %v800_v6 = vmax.f32 %v686_v52, 0.0  ;;  %v802_v52 = vmax.f32 %v692_v61, 0.0 }
 0x20a   : > { %v3047_v59 = vsub.f32 %v1088_v53, %v790_v49  ;;  %v1547_v55 = vadd.f32 %v1546_v11, %v1516_v37 }
 0x20c   : > { %v2339_v1 = vpop.f32.mrb[16].mxu1  ;;  %1331 = vmatmul.mubr.f32.gmra.mrb[40].mxu1 %v3047_v59  ;;  %v1548_v9 = vadd.f32 %v1547_v55, %v1517_v2 }
 0x20d   : > { %v1001_v3 = vadd.f32 %v2339_v1, %v2922_v18  ;;  %v995_v5 = vpop.f32.mrb[17].mxu1  ;;  %1336 = vmatprep.mubr.f32.mxu1 %v2470_v7  ;;  %v1518_v1 = vmul.f32 %v3047_v59, %v3047_v59 }
 0x20e   : > { %v996_v20 = vadd.f32 %v2922_v18, %v995_v5  ;;  %v698_v5 = vadd.f32 %v2855_v46, %v2917_v14  ;;  %v1519_v46 = vmul.f32 %v3044_v54, %v3044_v54 }
 0x20f   : > { %v1091_v32 = vmax.f32 %v1001_v3, 0.0 }
 0x210   : > { %v1090_v22 = vmax.f32 %v996_v20, 0.0  ;;  %1337 = vmatmul.mubr.f32.gmra.mrb[42].mxu1 %v3044_v54 }
 0x211   : > { %v3062_v26 = vsub.f32 %v1091_v32, %v796_v10  ;;  %1342 = vmatprep.mubr.f32.mxu1 %v2470_v7 }
 0x212   : > { %v3065_v27 = vsub.f32 %v1090_v22, %v794_v16  ;;  %v1549_v16 = vadd.f32 %v1548_v9, %v1518_v1  ;;  %v804_v22 = vmax.f32 %v698_v5, 0.0 }
 0x214   : > { %v2342_v38 = vpop.f32.mrb[18].mxu1  ;;  %1343 = vmatmul.mubr.f32.gmra.mrb[44].mxu1 %v3065_v27  ;;  %v1520_v40 = vmul.f32 %v3065_v27, %v3065_v27  ;;  %v1550_v37 = vadd.f32 %v1549_v16, %v1519_v46 }
 0x215   : > { %v1011_v33 = vadd.f32 %v2342_v38, %v2922_v18  ;;  %v1005_v49 = vpop.f32.mrb[19].mxu1  ;;  %1348 = vmatprep.mubr.f32.mxu1 %v2470_v7 }
 0x216   : > { %v1006_v34 = vadd.f32 %v2922_v18, %v1005_v49  ;;  %v704_v49 = vadd.f32 %v2858_v51, %v2917_v14  ;;  %v1551_v11 = vadd.f32 %v1550_v37, %v1520_v40 }
 0x217   : > { %v1093_v53 = vmax.f32 %v1011_v33, 0.0  ;;  %v710_v33 = vadd.f32 %v2873_v0, %v2917_v14 }
 0x218   : > { %v1092_v60 = vmax.f32 %v1006_v34, 0.0  ;;  %1349 = vmatmul.mubr.f32.gmra.mrb[46].mxu1 %v3062_v26  ;;  %v806_v51 = vmax.f32 %v704_v49, 0.0 }
 0x219   : > { %v3080_v62 = vsub.f32 %v1093_v53, %v800_v6  ;;  %1354 = vmatprep.mubr.f32.mxu1 %v2470_v7 }
 0x21a   : > { %v3087_v3 = vsub.f32 %v1092_v60, %v798_v24  ;;  %v1521_v24 = vmul.f32 %v3062_v26, %v3062_v26  ;;  %v808_v60 = vmax.f32 %v710_v33, 0.0 }
 0x21b   : > { %3945 = vst [vmem:[#allocation2_spill] sm:$0xff] %v3080_v62  ;;  %v1523_v16 = vmul.f32 %v3080_v62, %v3080_v62 }
 0x21c   : > { %3946 = vst [vmem:[#allocation3_spill] sm:$0xff] %v3087_v3  ;;  %v2345_v20 = vpop.f32.mrb[20].mxu1  ;;  %1355 = vmatmul.mubr.f32.gmra.mrb[48].mxu1 %v3087_v3  ;;  %v1522_v55 = vmul.f32 %v3087_v3, %v3087_v3  ;;  %v1552_v1 = vadd.f32 %v1551_v11, %v1521_v24  ;;  %v728_v24 = vadd.f32 %v2894_v36, %v2917_v14 }
 0x21d   : > { %v1021_v10 = vadd.f32 %v2345_v20, %v2922_v18  ;;  %v1015_v32 = vpop.f32.mrb[21].mxu1  ;;  %1360 = vmatprep.mubr.f32.mxu1 %v2470_v7 }
 0x21e   : > { %v1016_v19 = vadd.f32 %v2922_v18, %v1015_v32  ;;  %v1553_v9 = vadd.f32 %v1552_v1, %v1522_v55  ;;  %v716_v32 = vadd.f32 %v2888_v17, %v2917_v14 }
 0x21f   : > { %v1095_v56 = vmax.f32 %v1021_v10, 0.0  ;;  %v722_v10 = vadd.f32 %v2891_v23, %v2917_v14 }
 0x220   : > { %v1094_v28 = vmax.f32 %v1016_v19, 0.0  ;;  %1361 = vmatmul.mubr.f32.gmra.mrb[50].mxu1 %v3080_v62  ;;  %v1554_v46 = vadd.f32 %v1553_v9, %v1523_v16  ;;  %v810_v17 = vmax.f32 %v716_v32, 0.0 }
 0x221   : > { %v3102_v31 = vsub.f32 %v1095_v56, %v804_v22  ;;  %1366 = vmatprep.mubr.f32.mxu1 %v2470_v7  ;;  %v812_v40 = vmax.f32 %v722_v10, 0.0  ;;  %v814_v10 = vmax.f32 %v728_v24, 0.0 }
 0x222   : > { %v3105_v38 = vsub.f32 %v1094_v28, %v802_v52 }
 0x223   : > { %3947 = vst [vmem:[#allocation4_spill] sm:$0xff] %v3102_v31  ;;  %v1525_v11 = vmul.f32 %v3102_v31, %v3102_v31 }
 0x224   : > { %3948 = vst [vmem:[#allocation5_spill] sm:$0xff] %v3105_v38  ;;  %v2348_v34 = vpop.f32.mrb[22].mxu1  ;;  %1367 = vmatmul.mubr.f32.gmra.mrb[52].mxu1 %v3105_v38  ;;  %v1524_v19 = vmul.f32 %v3105_v38, %v3105_v38 }
 0x225   : > { %v1031_v6 = vadd.f32 %v2348_v34, %v2922_v18  ;;  %v1025_v53 = vpop.f32.mrb[23].mxu1  ;;  %1372 = vmatprep.mubr.f32.mxu1 %v2470_v7 }
 0x226   : > { %v1026_v0 = vadd.f32 %v2922_v18, %v1025_v53  ;;  %v1555_v37 = vadd.f32 %v1554_v46, %v1524_v19  ;;  %v734_v53 = vadd.f32 %v2897_v42, %v2917_v14 }
 0x227   : > { %v1097_v2 = vmax.f32 %v1031_v6, 0.0 }
 0x228   : > { %v1096_v5 = vmax.f32 %v1026_v0, 0.0  ;;  %1373 = vmatmul.mubr.f32.gmra.mrb[54].mxu1 %v3102_v31  ;;  %v1556_v55 = vadd.f32 %v1555_v37, %v1525_v11 }
 0x229   : > { %v3120_v61 = vsub.f32 %v1097_v2, %v808_v60  ;;  %1378 = vmatprep.mubr.f32.mxu1 %v2470_v7 }
 0x22a   : > { %v3123_v20 = vsub.f32 %v1096_v5, %v806_v51  ;;  %v816_v5 = vmax.f32 %v734_v53, 0.0 }
 0x22b   : > { %3949 = vst [vmem:[#allocation6_spill] sm:$0xff] %v3120_v61  ;;  %v1527_v42 = vmul.f32 %v3120_v61, %v3120_v61 }
 0x22c   : > { %3950 = vst [vmem:[#allocation7_spill] sm:$0xff] %v3123_v20  ;;  %v2351_v22 = vpop.f32.mrb[24].mxu1  ;;  %1379 = vmatmul.mubr.f32.gmra.mrb[56].mxu1 %v3123_v20  ;;  %v1526_v34 = vmul.f32 %v3123_v20, %v3123_v20 }
 0x22d   : > { %v1041_v56 = vadd.f32 %v2351_v22, %v2922_v18  ;;  %v1035_v52 = vpop.f32.mrb[25].mxu1  ;;  %1384 = vmatprep.mubr.f32.mxu1 %v2470_v7 }
 0x22e   : > { %v1036_v23 = vadd.f32 %v2922_v18, %v1035_v52  ;;  %v1557_v51 = vadd.f32 %v1556_v55, %v1526_v34  ;;  %v740_v52 = vadd.f32 %v2900_v50, %v2917_v14 }
 0x22f   : > { %v1099_v28 = vmax.f32 %v1041_v56, 0.0  ;;  %v746_v56 = vadd.f32 %v2903_v57, %v2917_v14 }
 0x230   : > { %v1098_v33 = vmax.f32 %v1036_v23, 0.0  ;;  %1385 = vmatmul.mubr.f32.gmra.mrb[58].mxu1 %v3120_v61  ;;  %v1558_v19 = vadd.f32 %v1557_v51, %v1527_v42  ;;  %v818_v50 = vmax.f32 %v740_v52, 0.0 }
 0x231   : > { %v3138_v49 = vsub.f32 %v1099_v28, %v812_v40  ;;  %1390 = vmatprep.mubr.f32.mxu1 %v2470_v7 }
 0x232   : > { %v3145_v6 = vsub.f32 %v1098_v33, %v810_v17  ;;  %v820_v33 = vmax.f32 %v746_v56, 0.0 }
 0x233   : > { %3951 = vst [vmem:[#allocation8_spill] sm:$0xff] %v3138_v49  ;;  %v1529_v17 = vmul.f32 %v3138_v49, %v3138_v49 }
 0x234   : > { %3952 = vst [vmem:[#allocation9_spill] sm:$0xff] %v3145_v6  ;;  %v2354_v0 = vpop.f32.mrb[26].mxu1  ;;  %1391 = vmatmul.mubr.f32.gmra.mrb[60].mxu1 %v3145_v6  ;;  %v1528_v36 = vmul.f32 %v3145_v6, %v3145_v6 }
 0x235   : > { %v1051_v60 = vadd.f32 %v2354_v0, %v2922_v18  ;;  %v1045_v2 = vpop.f32.mrb[27].mxu1  ;;  %1396 = vmatprep.mubr.f32.mxu1 %v2470_v7 }
 0x236   : > { %v1046_v1 = vadd.f32 %v2922_v18, %v1045_v2  ;;  %v1559_v46 = vadd.f32 %v1558_v19, %v1528_v36  ;;  %v752_v2 = vadd.f32 %v2906_v63, %v2917_v14 }
 0x237   : > { %v1101_v9 = vmax.f32 %v1051_v60, 0.0  ;;  %v758_v60 = vadd.f32 %v2909_v8, %v2917_v14 }
 0x238   : > { %v1100_v32 = vmax.f32 %v1046_v1, 0.0  ;;  %1397 = vmatmul.mubr.f32.gmra.mrb[62].mxu1 %v3138_v49  ;;  %v1560_v34 = vadd.f32 %v1559_v46, %v1529_v17  ;;  %v822_v63 = vmax.f32 %v752_v2, 0.0 }
 0x239   : > { %v3160_v16 = vsub.f32 %v1101_v9, %v816_v5  ;;  %1402 = vmatprep.mubr.f32.mxu1 %v2470_v7  ;;  %v824_v36 = vmax.f32 %v758_v60, 0.0 }
 0x23a   : > { %v3163_v22 = vsub.f32 %v1100_v32, %v814_v10 }
 0x23b   : > { %3953 = vst [vmem:[#allocation10_spill] sm:$0xff] %v3160_v16  ;;  %v1531_v51 = vmul.f32 %v3160_v16, %v3160_v16 }
 0x23c   : > { %3954 = vst [vmem:[#allocation11_spill] sm:$0xff] %v3163_v22  ;;  %v2357_v23 = vpop.f32.mrb[28].mxu1  ;;  %1403 = vmatmul.mubr.f32.gmra.mrb[64].mxu1 %v3163_v22  ;;  %v1530_v37 = vmul.f32 %v3163_v22, %v3163_v22 }
 0x23d   : > { %v1061_v40 = vadd.f32 %v2357_v23, %v2922_v18  ;;  %v1055_v28 = vpop.f32.mrb[29].mxu1  ;;  %1408 = vmatprep.mubr.f32.mxu1 %v2470_v7 }
 0x23e   : > { %v1056_v57 = vadd.f32 %v2922_v18, %v1055_v28  ;;  %v1561_v55 = vadd.f32 %v1560_v34, %v1530_v37 }
 0x23f   : > { %v1103_v11 = vmax.f32 %v1061_v40, 0.0 }
 0x240   : > { %v1102_v53 = vmax.f32 %v1056_v57, 0.0  ;;  %1409 = vmatmul.mubr.f32.gmra.mrb[66].mxu1 %v3160_v16  ;;  %v1562_v42 = vadd.f32 %v1561_v55, %v1531_v51 }
 0x241   : > { %v3178_v24 = vsub.f32 %v1103_v11, %v820_v33  ;;  %1414 = vmatprep.mubr.f32.mxu1 %v2470_v7 }
 0x242   : > { %v3181_v0 = vsub.f32 %v1102_v53, %v818_v50  ;;  %v1170_v53 = vld [vmem:[%s3910_s6] sm:$0x3] }
 0x243   : > { %3955 = vst [vmem:[#allocation12_spill] sm:$0xff] %v3178_v24  ;;  %v1533_v52 = vmul.f32 %v3178_v24, %v3178_v24  ;;  %v3222_v55 = vrot.slane %v1170_v53, %v404_v30 }
 0x244   : > { %3956 = vst [vmem:[#allocation13_spill] sm:$0xff] %v3181_v0  ;;  %v1532_v1 = vmul.f32 %v3181_v0, %v3181_v0  ;;  %v2360_v5 = vpop.f32.mrb[30].mxu1  ;;  %1415 = vmatmul.mubr.f32.gmra.mrb[68].mxu1 %v3181_v0 }
 0x245   : > { %v1071_v9 = vadd.f32 %v2360_v5, %v2922_v18  ;;  %v1065_v10 = vpop.f32.mrb[31].mxu1  ;;  %1420 = vmatprep.mubr.f32.mxu1 %v2470_v7 }
 0x246   : > { %v1066_v8 = vadd.f32 %v2922_v18, %v1065_v10  ;;  %v1563_v14 = vadd.f32 %v1562_v42, %v1532_v1 }
 0x247   : > { %v1105_v32 = vmax.f32 %v1071_v9, 0.0 }
 0x248   : > { %v1104_v19 = vmax.f32 %v1066_v8, 0.0  ;;  %1421 = vmatmul.mubr.f32.gmra.mrb[70].mxu1 %v3178_v24  ;;  %v1564_v23 = vadd.f32 %v1563_v14, %v1533_v52 }
 0x249   : > { %v3196_v56 = vsub.f32 %v1105_v32, %v824_v36  ;;  %1426 = vmatprep.mubr.f32.mxu1 %v2470_v7 }
 0x24a   : > { %v3201_v46 = vsub.f32 %v1104_v19, %v822_v63 }
 0x24b   : > { %3957 = vst [vmem:[#allocation14_spill] sm:$0xff] %v3196_v56  ;;  %v1535_v40 = vmul.f32 %v3196_v56, %v3196_v56 }
 0x24c   : > { %3958 = vst [vmem:[#allocation15_spill] sm:$0xff] %v3201_v46  ;;  %v1534_v18 = vmul.f32 %v3201_v46, %v3201_v46  ;;  %1427 = vmatmul.mubr.f32.gmra.mrb[72].mxu1 %v3201_v46 }
 0x24d   : > { %1432 = vmatprep.mubr.f32.mxu1 %v2470_v7  ;;  %v3218_v7 = vrot.slane %v1170_v53, %v400_v13 }
 0x24e   : > { %v1565_v28 = vadd.f32 %v1564_v23, %v1534_v18 }
 0x250   : > { %v1566_v17 = vadd.f32 %v1565_v28, %v1535_v40  ;;  %1433 = vmatmul.mubr.f32.gmra.mrb[74].mxu1 %v3196_v56 }
 0x252   : > { %v1567_v37 = vrot.slane %v1566_v17, 4 }
 0x254   : > { %v1568_v57 = vadd.f32 %v1567_v37, %v1566_v17 }
 0x256   : > { %v1569_v33 = vrot.slane %v1568_v57, 2 }
 0x258   : > { %v1570_v11 = vadd.f32 %v1569_v33, %v1568_v57 }
 0x25a   : > { %v1571_v50 = vrot.slane %v1570_v11, 1 }
 0x25c   : > { %v3210_v34 = vadd.f32 %v1571_v50, %v1570_v11 }
 0x25e   : > { %1646 = vst [vmem:[%s2565_s12] sm:$0x1] (!%p2149_p5), %v3210_v34 }
 0x2a7   : > { %v1248_v60 = vpop.f32.mrb[64].mxu0 }
 0x2a8   : > { %v1249_v2 = vadd.f32 %v1248_v60, %v3218_v7  ;;  %v1250_v51 = vpop.f32.mrb[65].mxu0 }
 0x2a9   : > { %v1251_v13 = vadd.f32 %v1250_v51, %v3222_v55 }
 0x2aa   : > { %1472 = vst.msk [vmem:[%s3227_s19] sm:$0xff] %vm1471_vm1, %v1249_v2 }
 0x2ab   : > { %v1254_v1 = vpop.f32.mrb[66].mxu0  ;;  %v3235_v9 = vsub.f32 %v1251_v13, %v2932_v45 }
 0x2ac   : > { %v1255_v30 = vadd.f32 %v1254_v1, %v3218_v7  ;;  %v1256_v5 = vpop.f32.mrb[67].mxu0 }
 0x2ad   : > { %v1257_v10 = vadd.f32 %v1256_v5, %v3222_v55  ;;  %v1573_v63 = vmul.f32 %v3235_v9, %v3235_v9 }
 0x2ae   : > { %1473 = vst.msk [vmem:[%s3227_s19 + $0x8] sm:$0xff] %vm1471_vm1, %v1255_v30 }
 0x2af   : > { %v3241_v42 = vsub.f32 %v1257_v10, %v2930_v41  ;;  %v1260_v8 = vpop.f32.mrb[68].mxu0 }
 0x2b0   : > { %v1261_v36 = vadd.f32 %v1260_v8, %v3218_v7  ;;  %v1262_v32 = vpop.f32.mrb[69].mxu0 }
 0x2b1   : > { %v1574_v14 = vmul.f32 %v3241_v42, %v3241_v42  ;;  %v1263_v19 = vadd.f32 %v1262_v32, %v3222_v55 }
 0x2b2   : > { %1474 = vst.msk [vmem:[%s3227_s19 + $0x10] sm:$0xff] %vm1471_vm1, %v1261_v36 }
 0x2b3   : > { %v1605_v52 = vadd.f32 %v1574_v14, %v1573_v63  ;;  %v3252_v18 = vsub.f32 %v1263_v19, %v2946_v58  ;;  %v1266_v23 = vpop.f32.mrb[70].mxu0 }
 0x2b4   : > { %v1267_v40 = vadd.f32 %v1266_v23, %v3218_v7  ;;  %v1268_v28 = vpop.f32.mrb[71].mxu0 }
 0x2b5   : > { %v1575_v17 = vmul.f32 %v3252_v18, %v3252_v18  ;;  %v1269_v37 = vadd.f32 %v1268_v28, %v3222_v55 }
 0x2b6   : > { %1475 = vst.msk [vmem:[%s3227_s19 + $0x18] sm:$0xff] %vm1471_vm1, %v1267_v40 }
 0x2b7   : > { %v1606_v57 = vadd.f32 %v1605_v52, %v1575_v17  ;;  %v3261_v33 = vsub.f32 %v1269_v37, %v2943_v4  ;;  %v1272_v11 = vpop.f32.mrb[72].mxu0 }
 0x2b8   : > { %v1273_v50 = vadd.f32 %v1272_v11, %v3218_v7  ;;  %v1274_v53 = vpop.f32.mrb[73].mxu0 }
 0x2b9   : > { %v1576_v60 = vmul.f32 %v3261_v33, %v3261_v33  ;;  %v1275_v2 = vadd.f32 %v1274_v53, %v3222_v55 }
 0x2ba   : > { %1476 = vst.msk [vmem:[%s3227_s19 + $0x20] sm:$0xff] %vm1471_vm1, %v1273_v50 }
 0x2bb   : > { %v1607_v51 = vadd.f32 %v1606_v57, %v1576_v60  ;;  %v3270_v13 = vsub.f32 %v1275_v2, %v2960_v15  ;;  %v1278_v1 = vpop.f32.mrb[74].mxu0 }
 0x2bc   : > { %v1279_v30 = vadd.f32 %v1278_v1, %v3218_v7  ;;  %v1280_v5 = vpop.f32.mrb[75].mxu0 }
 0x2bd   : > { %v1577_v10 = vmul.f32 %v3270_v13, %v3270_v13  ;;  %v1281_v8 = vadd.f32 %v1280_v5, %v3222_v55 }
 0x2be   : > { %1477 = vst.msk [vmem:[%s3227_s19 + $0x28] sm:$0xff] %vm1471_vm1, %v1279_v30 }
 0x2bf   : > { %v1608_v36 = vadd.f32 %v1607_v51, %v1577_v10  ;;  %v3279_v32 = vsub.f32 %v1281_v8, %v2957_v25  ;;  %v1284_v63 = vpop.f32.mrb[76].mxu0 }
 0x2c0   : > { %v1285_v14 = vadd.f32 %v1284_v63, %v3218_v7  ;;  %v1286_v19 = vpop.f32.mrb[77].mxu0 }
 0x2c1   : > { %v1578_v52 = vmul.f32 %v3279_v32, %v3279_v32  ;;  %v1287_v23 = vadd.f32 %v1286_v19, %v3222_v55 }
 0x2c2   : > { %1478 = vst.msk [vmem:[%s3227_s19 + $0x30] sm:$0xff] %vm1471_vm1, %v1285_v14 }
 0x2c3   : > { %v1609_v40 = vadd.f32 %v1608_v36, %v1578_v52  ;;  %v3288_v28 = vsub.f32 %v1287_v23, %v2974_v35  ;;  %v1290_v17 = vpop.f32.mrb[78].mxu0 }
 0x2c4   : > { %v1291_v37 = vadd.f32 %v1290_v17, %v3218_v7  ;;  %v1292_v57 = vpop.f32.mrb[79].mxu0 }
 0x2c5   : > { %v1579_v11 = vmul.f32 %v3288_v28, %v3288_v28  ;;  %v1293_v50 = vadd.f32 %v1292_v57, %v3222_v55 }
 0x2c6   : > { %1479 = vst.msk [vmem:[%s3227_s19 + $0x38] sm:$0xff] %vm1471_vm1, %v1291_v37 }
 0x2c7   : > { %v1610_v53 = vadd.f32 %v1609_v40, %v1579_v11  ;;  %v3297_v60 = vsub.f32 %v1293_v50, %v2971_v39  ;;  %v1296_v2 = vpop.f32.mrb[80].mxu0 }
 0x2c8   : > { %v1297_v51 = vadd.f32 %v1296_v2, %v3218_v7  ;;  %v1298_v1 = vpop.f32.mrb[81].mxu0 }
 0x2c9   : > { %v1580_v30 = vmul.f32 %v3297_v60, %v3297_v60  ;;  %v1299_v5 = vadd.f32 %v1298_v1, %v3222_v55 }
 0x2ca   : > { %1480 = vst.msk [vmem:[%s3227_s19 + $0x40] sm:$0xff] %vm1471_vm1, %v1297_v51 }
 0x2cb   : > { %v1611_v10 = vadd.f32 %v1610_v53, %v1580_v30  ;;  %v3306_v8 = vsub.f32 %v1299_v5, %v2988_v44  ;;  %v1302_v36 = vpop.f32.mrb[82].mxu0 }
 0x2cc   : > { %v1303_v63 = vadd.f32 %v1302_v36, %v3218_v7  ;;  %v1304_v14 = vpop.f32.mrb[83].mxu0 }
 0x2cd   : > { %v1581_v19 = vmul.f32 %v3306_v8, %v3306_v8  ;;  %v1305_v52 = vadd.f32 %v1304_v14, %v3222_v55 }
 0x2ce   : > { %1481 = vst.msk [vmem:[%s3227_s19 + $0x48] sm:$0xff] %vm1471_vm1, %v1303_v63 }
 0x2cf   : > { %v1612_v23 = vadd.f32 %v1611_v10, %v1581_v19  ;;  %v3315_v40 = vsub.f32 %v1305_v52, %v2985_v48  ;;  %v1308_v17 = vpop.f32.mrb[32].mxu1 }
 0x2d0   : > { %v1309_v37 = vadd.f32 %v1308_v17, %v3218_v7  ;;  %v1310_v57 = vpop.f32.mrb[33].mxu1 }
 0x2d1   : > { %v1582_v11 = vmul.f32 %v3315_v40, %v3315_v40  ;;  %v1311_v50 = vadd.f32 %v1310_v57, %v3222_v55 }
 0x2d2   : > { %1482 = vst.msk [vmem:[%s3227_s19 + $0x50] sm:$0xff] %vm1471_vm1, %v1309_v37 }
 0x2d3   : > { %v1613_v53 = vadd.f32 %v1612_v23, %v1582_v11  ;;  %v3324_v2 = vsub.f32 %v1311_v50, %v3007_v47  ;;  %v1314_v51 = vpop.f32.mrb[34].mxu1 }
 0x2d4   : > { %v1315_v1 = vadd.f32 %v1314_v51, %v3218_v7  ;;  %v1316_v30 = vpop.f32.mrb[35].mxu1 }
 0x2d5   : > { %v1583_v5 = vmul.f32 %v3324_v2, %v3324_v2  ;;  %v1317_v10 = vadd.f32 %v1316_v30, %v3222_v55 }
 0x2d6   : > { %1483 = vst.msk [vmem:[%s3227_s19 + $0x58] sm:$0xff] %vm1471_vm1, %v1315_v1 }
 0x2d7   : > { %v1614_v36 = vadd.f32 %v1613_v53, %v1583_v5  ;;  %v3333_v63 = vsub.f32 %v1317_v10, %v3005_v43  ;;  %v1320_v14 = vpop.f32.mrb[36].mxu1 }
 0x2d8   : > { %v1321_v19 = vadd.f32 %v1320_v14, %v3218_v7  ;;  %v1322_v52 = vpop.f32.mrb[37].mxu1 }
 0x2d9   : > { %v1584_v23 = vmul.f32 %v3333_v63, %v3333_v63  ;;  %v1323_v17 = vadd.f32 %v1322_v52, %v3222_v55 }
 0x2da   : > { %1484 = vst.msk [vmem:[%s3227_s19 + $0x60] sm:$0xff] %vm1471_vm1, %v1321_v19 }
 0x2db   : > { %v1615_v37 = vadd.f32 %v1614_v36, %v1584_v23  ;;  %v3342_v57 = vsub.f32 %v1323_v17, %v3029_v21  ;;  %v1326_v11 = vpop.f32.mrb[38].mxu1 }
 0x2dc   : > { %v1327_v50 = vadd.f32 %v1326_v11, %v3218_v7  ;;  %v1328_v53 = vpop.f32.mrb[39].mxu1 }
 0x2dd   : > { %v1585_v51 = vmul.f32 %v3342_v57, %v3342_v57  ;;  %v1329_v1 = vadd.f32 %v1328_v53, %v3222_v55 }
 0x2de   : > { %1485 = vst.msk [vmem:[%s3227_s19 + $0x68] sm:$0xff] %vm1471_vm1, %v1327_v50 }
 0x2df   : > { %v1616_v30 = vadd.f32 %v1615_v37, %v1585_v51  ;;  %v3351_v5 = vsub.f32 %v1329_v1, %v3022_v12  ;;  %v1332_v10 = vpop.f32.mrb[40].mxu1 }
 0x2e0   : > { %v1333_v36 = vadd.f32 %v1332_v10, %v3218_v7  ;;  %v1334_v14 = vpop.f32.mrb[41].mxu1 }
 0x2e1   : > { %v1586_v19 = vmul.f32 %v3351_v5, %v3351_v5  ;;  %v1335_v52 = vadd.f32 %v1334_v14, %v3222_v55 }
 0x2e2   : > { %1486 = vst.msk [vmem:[%s3227_s19 + $0x70] sm:$0xff] %vm1471_vm1, %v1333_v36 }
 0x2e3   : > { %v1617_v23 = vadd.f32 %v1616_v30, %v1586_v19  ;;  %v3360_v17 = vsub.f32 %v1335_v52, %v3047_v59  ;;  %v1338_v37 = vpop.f32.mrb[42].mxu1 }
 0x2e4   : > { %v1339_v11 = vadd.f32 %v1338_v37, %v3218_v7  ;;  %v1340_v50 = vpop.f32.mrb[43].mxu1 }
 0x2e5   : > { %3959 = vst [vmem:[#allocation16_spill] sm:$0xff] %v3360_v17  ;;  %v1587_v53 = vmul.f32 %v3360_v17, %v3360_v17  ;;  %v1341_v51 = vadd.f32 %v1340_v50, %v3222_v55 }
 0x2e6   : > { %1487 = vst.msk [vmem:[%s3227_s19 + $0x78] sm:$0xff] %vm1471_vm1, %v1339_v11 }
 0x2e7   : > { %v1618_v1 = vadd.f32 %v1617_v23, %v1587_v53  ;;  %v3369_v10 = vsub.f32 %v1341_v51, %v3044_v54  ;;  %v1344_v30 = vpop.f32.mrb[44].mxu1 }
 0x2e8   : > { %v1345_v36 = vadd.f32 %v1344_v30, %v3218_v7  ;;  %v1346_v14 = vpop.f32.mrb[45].mxu1 }
 0x2e9   : > { %3960 = vst [vmem:[#allocation17_spill] sm:$0xff] %v3369_v10  ;;  %v1588_v19 = vmul.f32 %v3369_v10, %v3369_v10  ;;  %v1347_v52 = vadd.f32 %v1346_v14, %v3222_v55 }
 0x2ea   : > { %1488 = vst.msk [vmem:[%s3227_s19 + $0x80] sm:$0xff] %vm1471_vm1, %v1345_v36 }
 0x2eb   : > { %v1619_v37 = vadd.f32 %v1618_v1, %v1588_v19  ;;  %v3378_v11 = vsub.f32 %v1347_v52, %v3065_v27  ;;  %v1350_v23 = vpop.f32.mrb[46].mxu1 }
 0x2ec   : > { %v1351_v50 = vadd.f32 %v1350_v23, %v3218_v7  ;;  %v1352_v53 = vpop.f32.mrb[47].mxu1 }
 0x2ed   : > { %3961 = vst [vmem:[#allocation18_spill] sm:$0xff] %v3378_v11  ;;  %v1589_v51 = vmul.f32 %v3378_v11, %v3378_v11  ;;  %v1353_v30 = vadd.f32 %v1352_v53, %v3222_v55 }
 0x2ee   : > { %1489 = vst.msk [vmem:[%s3227_s19 + $0x88] sm:$0xff] %vm1471_vm1, %v1351_v50 }
 0x2ef   : > { %v1620_v14 = vadd.f32 %v1619_v37, %v1589_v51  ;;  %v3387_v36 = vsub.f32 %v1353_v30, %v3062_v26  ;;  %v1356_v1 = vpop.f32.mrb[48].mxu1 }
 0x2f0   : > { %v1357_v19 = vadd.f32 %v1356_v1, %v3218_v7  ;;  %v1358_v52 = vpop.f32.mrb[49].mxu1 }
 0x2f1   : > { %3962 = vst [vmem:[#allocation19_spill] sm:$0xff] %v3387_v36  ;;  %v1590_v23 = vmul.f32 %v3387_v36, %v3387_v36  ;;  %v1359_v10 = vadd.f32 %v1358_v52, %v3222_v55 }
 0x2f2   : > { %1490 = vst.msk [vmem:[%s3227_s19 + $0x90] sm:$0xff] %vm1471_vm1, %v1357_v19 }
 0x2f3   : > { %v1621_v53 = vadd.f32 %v1620_v14, %v1590_v23  ;;  %v3396_v50 = vsub.f32 %v1359_v10, %v3087_v3  ;;  %v1362_v37 = vpop.f32.mrb[50].mxu1 }
 0x2f4   : > { %v1363_v51 = vadd.f32 %v1362_v37, %v3218_v7  ;;  %v1364_v30 = vpop.f32.mrb[51].mxu1 }
 0x2f5   : > { %3963 = vst [vmem:[#allocation20_spill] sm:$0xff] %v3396_v50  ;;  %v1591_v1 = vmul.f32 %v3396_v50, %v3396_v50  ;;  %v1365_v11 = vadd.f32 %v1364_v30, %v3222_v55 }
 0x2f6   : > { %1491 = vst.msk [vmem:[%s3227_s19 + $0x98] sm:$0xff] %vm1471_vm1, %v1363_v51 }
 0x2f7   : > { %v1622_v52 = vadd.f32 %v1621_v53, %v1591_v1  ;;  %v3405_v19 = vsub.f32 %v1365_v11, %v3080_v62  ;;  %v1368_v14 = vpop.f32.mrb[52].mxu1 }
 0x2f8   : > { %v1369_v10 = vadd.f32 %v1368_v14, %v3218_v7  ;;  %v1370_v23 = vpop.f32.mrb[53].mxu1 }
 0x2f9   : > { %3964 = vst [vmem:[#allocation21_spill] sm:$0xff] %v3405_v19  ;;  %v1592_v37 = vmul.f32 %v3405_v19, %v3405_v19  ;;  %v1371_v36 = vadd.f32 %v1370_v23, %v3222_v55 }
 0x2fa   : > { %1492 = vst.msk [vmem:[%s3227_s19 + $0xa0] sm:$0xff] %vm1471_vm1, %v1369_v10 }
 0x2fb   : > { %v1623_v30 = vadd.f32 %v1622_v52, %v1592_v37  ;;  %v3414_v51 = vsub.f32 %v1371_v36, %v3105_v38  ;;  %v1374_v53 = vpop.f32.mrb[54].mxu1 }
 0x2fc   : > { %v1375_v11 = vadd.f32 %v1374_v53, %v3218_v7  ;;  %v1376_v1 = vpop.f32.mrb[55].mxu1 }
 0x2fd   : > { %3965 = vst [vmem:[#allocation22_spill] sm:$0xff] %v3414_v51  ;;  %v1593_v14 = vmul.f32 %v3414_v51, %v3414_v51  ;;  %v1377_v50 = vadd.f32 %v1376_v1, %v3222_v55 }
 0x2fe   : > { %1493 = vst.msk [vmem:[%s3227_s19 + $0xa8] sm:$0xff] %vm1471_vm1, %v1375_v11 }
 0x2ff   : > { %v1624_v23 = vadd.f32 %v1623_v30, %v1593_v14  ;;  %v3423_v10 = vsub.f32 %v1377_v50, %v3102_v31  ;;  %v1380_v52 = vpop.f32.mrb[56].mxu1 }
 0x300   : > { %v1381_v36 = vadd.f32 %v1380_v52, %v3218_v7  ;;  %v1382_v37 = vpop.f32.mrb[57].mxu1 }
 0x301   : > { %3966 = vst [vmem:[#allocation23_spill] sm:$0xff] %v3423_v10  ;;  %v1594_v53 = vmul.f32 %v3423_v10, %v3423_v10  ;;  %v1383_v19 = vadd.f32 %v1382_v37, %v3222_v55 }
 0x302   : > { %1494 = vst.msk [vmem:[%s3227_s19 + $0xb0] sm:$0xff] %vm1471_vm1, %v1381_v36 }
 0x303   : > { %v1625_v1 = vadd.f32 %v1624_v23, %v1594_v53  ;;  %v3432_v11 = vsub.f32 %v1383_v19, %v3123_v20  ;;  %v1386_v30 = vpop.f32.mrb[58].mxu1 }
 0x304   : > { %v1387_v50 = vadd.f32 %v1386_v30, %v3218_v7  ;;  %v1388_v14 = vpop.f32.mrb[59].mxu1 }
 0x305   : > { %3967 = vst [vmem:[#allocation24_spill] sm:$0xff] %v3432_v11  ;;  %v1595_v52 = vmul.f32 %v3432_v11, %v3432_v11  ;;  %v1389_v51 = vadd.f32 %v1388_v14, %v3222_v55 }
 0x306   : > { %1495 = vst.msk [vmem:[%s3227_s19 + $0xb8] sm:$0xff] %vm1471_vm1, %v1387_v50 }
 0x307   : > { %v1626_v37 = vadd.f32 %v1625_v1, %v1595_v52  ;;  %v3441_v36 = vsub.f32 %v1389_v51, %v3120_v61  ;;  %v1392_v23 = vpop.f32.mrb[60].mxu1 }
 0x308   : > { %v1393_v19 = vadd.f32 %v1392_v23, %v3218_v7  ;;  %v1394_v53 = vpop.f32.mrb[61].mxu1 }
 0x309   : > { %3968 = vst [vmem:[#allocation25_spill] sm:$0xff] %v3441_v36  ;;  %v1596_v30 = vmul.f32 %v3441_v36, %v3441_v36  ;;  %v1395_v10 = vadd.f32 %v1394_v53, %v3222_v55 }
 0x30a   : > { %1496 = vst.msk [vmem:[%s3227_s19 + $0xc0] sm:$0xff] %vm1471_vm1, %v1393_v19 }
 0x30b   : > { %v1627_v14 = vadd.f32 %v1626_v37, %v1596_v30  ;;  %v3450_v50 = vsub.f32 %v1395_v10, %v3145_v6  ;;  %v1398_v1 = vpop.f32.mrb[62].mxu1 }
 0x30c   : > { %v1399_v51 = vadd.f32 %v1398_v1, %v3218_v7  ;;  %v1400_v52 = vpop.f32.mrb[63].mxu1 }
 0x30d   : > { %3969 = vst [vmem:[#allocation26_spill] sm:$0xff] %v3450_v50  ;;  %v1597_v23 = vmul.f32 %v3450_v50, %v3450_v50  ;;  %v1401_v11 = vadd.f32 %v1400_v52, %v3222_v55 }
 0x30e   : > { %1497 = vst.msk [vmem:[%s3227_s19 + $0xc8] sm:$0xff] %vm1471_vm1, %v1399_v51 }
 0x30f   : > { %v1628_v53 = vadd.f32 %v1627_v14, %v1597_v23  ;;  %v3459_v19 = vsub.f32 %v1401_v11, %v3138_v49  ;;  %v1404_v37 = vpop.f32.mrb[64].mxu1 }
 0x310   : > { %v1405_v10 = vadd.f32 %v1404_v37, %v3218_v7  ;;  %v1406_v30 = vpop.f32.mrb[65].mxu1 }
 0x311   : > { %3970 = vst [vmem:[#allocation27_spill] sm:$0xff] %v3459_v19  ;;  %v1598_v1 = vmul.f32 %v3459_v19, %v3459_v19  ;;  %v1407_v36 = vadd.f32 %v1406_v30, %v3222_v55 }
 0x312   : > { %1498 = vst.msk [vmem:[%s3227_s19 + $0xd0] sm:$0xff] %vm1471_vm1, %v1405_v10 }
 0x313   : > { %v1629_v52 = vadd.f32 %v1628_v53, %v1598_v1  ;;  %v3468_v51 = vsub.f32 %v1407_v36, %v3163_v22  ;;  %v1410_v14 = vpop.f32.mrb[66].mxu1 }
 0x314   : > { %v1411_v11 = vadd.f32 %v1410_v14, %v3218_v7  ;;  %v1412_v23 = vpop.f32.mrb[67].mxu1 }
 0x315   : > { %3971 = vst [vmem:[#allocation28_spill] sm:$0xff] %v3468_v51  ;;  %v1599_v37 = vmul.f32 %v3468_v51, %v3468_v51  ;;  %v1413_v50 = vadd.f32 %v1412_v23, %v3222_v55 }
 0x316   : > { %1499 = vst.msk [vmem:[%s3227_s19 + $0xd8] sm:$0xff] %vm1471_vm1, %v1411_v11 }
 0x317   : > { %v1630_v30 = vadd.f32 %v1629_v52, %v1599_v37  ;;  %v3477_v10 = vsub.f32 %v1413_v50, %v3160_v16  ;;  %v1416_v53 = vpop.f32.mrb[68].mxu1 }
 0x318   : > { %v1417_v36 = vadd.f32 %v1416_v53, %v3218_v7  ;;  %v1418_v1 = vpop.f32.mrb[69].mxu1 }
 0x319   : > { %3972 = vst [vmem:[#allocation29_spill] sm:$0xff] %v3477_v10  ;;  %v1600_v14 = vmul.f32 %v3477_v10, %v3477_v10  ;;  %v1419_v19 = vadd.f32 %v1418_v1, %v3222_v55 }
 0x31a   : > { %1500 = vst.msk [vmem:[%s3227_s19 + $0xe0] sm:$0xff] %vm1471_vm1, %v1417_v36 }
 0x31b   : > { %v1631_v23 = vadd.f32 %v1630_v30, %v1600_v14  ;;  %v3486_v11 = vsub.f32 %v1419_v19, %v3181_v0  ;;  %v1422_v52 = vpop.f32.mrb[70].mxu1 }
 0x31c   : > { %v1423_v50 = vadd.f32 %v1422_v52, %v3218_v7  ;;  %v1424_v37 = vpop.f32.mrb[71].mxu1 }
 0x31d   : > { %3973 = vst [vmem:[#allocation30_spill] sm:$0xff] %v3486_v11  ;;  %v1601_v53 = vmul.f32 %v3486_v11, %v3486_v11  ;;  %v1425_v51 = vadd.f32 %v1424_v37, %v3222_v55 }
 0x31e   : > { %1501 = vst.msk [vmem:[%s3227_s19 + $0xe8] sm:$0xff] %vm1471_vm1, %v1423_v50 }
 0x31f   : > { %v1632_v1 = vadd.f32 %v1631_v23, %v1601_v53  ;;  %v3495_v36 = vsub.f32 %v1425_v51, %v3178_v24  ;;  %v1428_v30 = vpop.f32.mrb[72].mxu1 }
 0x320   : > { %v1429_v19 = vadd.f32 %v1428_v30, %v3218_v7  ;;  %v1430_v14 = vpop.f32.mrb[73].mxu1 }
 0x321   : > { %3974 = vst [vmem:[#allocation31_spill] sm:$0xff] %v3495_v36  ;;  %v1602_v52 = vmul.f32 %v3495_v36, %v3495_v36  ;;  %v1431_v10 = vadd.f32 %v1430_v14, %v3222_v55 }
 0x322   : > { %1502 = vst.msk [vmem:[%s3227_s19 + $0xf0] sm:$0xff] %vm1471_vm1, %v1429_v19 }
 0x323   : > { %v1633_v11 = vadd.f32 %v1632_v1, %v1602_v52  ;;  %v3504_v37 = vsub.f32 %v1431_v10, %v3201_v46  ;;  %v1434_v50 = vpop.f32.mrb[74].mxu1 }
 0x324   : > { %v1435_v23 = vadd.f32 %v1434_v50, %v3218_v7  ;;  %v1436_v51 = vpop.f32.mrb[75].mxu1 }
 0x325   : > { %3975 = vst [vmem:[#allocation32_spill] sm:$0xff] %v3504_v37  ;;  %v1603_v53 = vmul.f32 %v3504_v37, %v3504_v37  ;;  %v1437_v30 = vadd.f32 %v1436_v51, %v3222_v55 }
 0x326   : > { %1503 = vst.msk [vmem:[%s3227_s19 + $0xf8] sm:$0xff] %vm1471_vm1, %v1435_v23 }
 0x327   : > { %v1634_v36 = vadd.f32 %v1633_v11, %v1603_v53  ;;  %v3513_v14 = vsub.f32 %v1437_v30, %v3196_v56 }
 0x329   : > { %3976 = vst [vmem:[#allocation33_spill] sm:$0xff] %v3513_v14  ;;  %v1604_v1 = vmul.f32 %v3513_v14, %v3513_v14 }
 0x32b   : > { %v1635_v10 = vadd.f32 %v1634_v36, %v1604_v1 }
 0x32d   : > { %v1636_v19 = vrot.slane %v1635_v10, 4 }
 0x32f   : > { %v1637_v52 = vadd.f32 %v1636_v19, %v1635_v10 }
 0x331   : > { %v1638_v46 = vrot.slane %v1637_v52, 2  ;;  %1645 = sbr.rel (%p2149_p5) target bundleno = 826 (0x33a), region = 52 }
 0x333   : > { %v1639_v7 = vadd.f32 %v1638_v46, %v1637_v52 }
 0x335   : > { %v1640_v50 = vrot.slane %v1639_v7, 1 }
 0x337   : > { %v1641_v24 = vadd.f32 %v1640_v50, %v1639_v7 }
 0x339   : > { %1647 = vst [vmem:[%s2565_s12 + $0x1] sm:$0x1] %v1641_v24 }
 0x33a PF: > { %p2150_p6 = scmp.ne.s32.totalorder %s2522_s28, 1 }
 0x33c   : > { %1651 = sbr.rel (%p2150_p6) target bundleno = 932 (0x3a4), region = 56 }
 0x343   : > { %s2151_s13 = sshll.u32 %s2522_s28, 8  ;;  %v1654_v55 = vadd.s32 8, %v2707_v29  ;;  %v1655_v46 = vadd.s32 16, %v2707_v29  ;;  %v1656_v36 = vadd.s32 24, %v2707_v29  ;;  %v1657_v24 = vadd.s32 32, %v2707_v29 }
 0x344   : > { %v3524_v11 = vstv %s2151_s13  ;;  %v1658_v53 = vadd.s32 40, %v2707_v29  ;;  %v1659_v30 = vadd.s32 48, %v2707_v29  ;;  %v1660_v1 = vadd.s32 56, %v2707_v29 }
 0x345   : > { %v1687_v23 = vadd.s32 %v3524_v11, %v2707_v29  ;;  %v1688_v34 = vadd.s32 %v3524_v11, %v1654_v55  ;;  %v1689_v51 = vadd.s32 %v3524_v11, %v1655_v46  ;;  %v3537_v10 = vadd.s32 %v3524_v11, %v1656_v36 }
 0x346   : > { %v1661_v19 = vadd.s32 64, %v2707_v29  ;;  %v1662_v52 = vadd.s32 72, %v2707_v29  ;;  %v1663_v7 = vadd.s32 80, %v2707_v29  ;;  %v1664_v50 = vadd.s32 88, %v2707_v29 }
 0x347   : > { %vm1719_vm2 = vcmp.lt.s32.totalorder %v1687_v23, 288  ;;  %vm1720_vm3 = vcmp.lt.s32.totalorder %v1688_v34, 288  ;;  %v1665_v55 = vadd.s32 96, %v2707_v29  ;;  %v3545_v46 = vadd.s32 104, %v2707_v29 }
 0x348   : > { %v3548_v14 = vadd.s32 %v3524_v11, %v1657_v24  ;;  %vm1721_vm4 = vcmp.lt.s32.totalorder %v1689_v51, 288  ;;  %v3551_v36 = vadd.s32 112, %v2707_v29  ;;  %v3554_v37 = vadd.s32 120, %v2707_v29 }
 0x349   : > { %v1815_v56 = vsel %vm1719_vm2, %v2932_v45, 0.0  ;;  %v1816_v0 = vsel %vm1720_vm3, %v2930_v41, 0.0  ;;  %v3561_v16 = vadd.s32 128, %v2707_v29  ;;  %v3564_v22 = vadd.s32 136, %v2707_v29 }
 0x34a   : > { %v3567_v24 = vadd.s32 %v3524_v11, %v1658_v53  ;;  %vm1722_vm5 = vcmp.lt.s32.totalorder %v3537_v10, 288  ;;  %v3571_v49 = vadd.s32 144, %v2707_v29  ;;  %v3574_v6 = vadd.s32 152, %v2707_v29 }
 0x34b   : > { %v3577_v45 = vadd.s32 160, %v2707_v29  ;;  %v1817_v41 = vsel %vm1721_vm4, %v2946_v58, 0.0  ;;  %v3582_v61 = vadd.s32 %v3524_v11, %v1659_v30  ;;  %vm1723_vm6 = vcmp.lt.s32.totalorder %v3548_v14, 288 }
 0x34c   : > { %v1879_v53 = vmul.f32 %v1815_v56, %v1815_v56  ;;  %v1880_v20 = vmul.f32 %v1816_v0, %v1816_v0  ;;  %v3586_v31 = vadd.s32 168, %v2707_v29  ;;  %v3589_v38 = vadd.s32 176, %v2707_v29 }
 0x34d   : > { %v3592_v62 = vadd.s32 %v3524_v11, %v1660_v1  ;;  %v1818_v58 = vsel %vm1722_vm5, %v2943_v4, 0.0  ;;  %v3598_v30 = vadd.s32 184, %v2707_v29  ;;  %v3601_v17 = vadd.s32 192, %v2707_v29 }
 0x34e   : > { %3977 = vst [vmem:[#allocation34_spill] sm:$0xff] %v3589_v38  ;;  %vm1724_vm7 = vcmp.lt.s32.totalorder %v3567_v24, 288  ;;  %v1881_v0 = vmul.f32 %v1817_v41, %v1817_v41  ;;  %v3605_v56 = vadd.s32 200, %v2707_v29  ;;  %v3608_v3 = vadd.s32 208, %v2707_v29 }
 0x34f   : > { %3978 = vst [vmem:[#allocation35_spill] sm:$0xff] %v3598_v30  ;;  %3979 = vst [vmem:[#allocation36_spill] sm:$0xff] %v3601_v17  ;;  %v3611_v1 = vadd.s32 216, %v2707_v29  ;;  %v1819_v4 = vsel %vm1723_vm6, %v2960_v15, 0.0  ;;  %v3617_v30 = vadd.s32 %v3524_v11, %v1661_v19  ;;  %vm1725_vm8 = vcmp.lt.s32.totalorder %v3582_v61, 288 }
 0x350   : > { %3980 = vst [vmem:[#allocation37_spill] sm:$0xff] %v3605_v56  ;;  %v1882_v17 = vmul.f32 %v1818_v58, %v1818_v58  ;;  %v1911_v41 = vadd.f32 %v1880_v20, %v1879_v53  ;;  %v3621_v38 = vadd.s32 224, %v2707_v29  ;;  %v3624_v56 = vadd.s32 %v3524_v11, %v1662_v52 }
 0x351   : > { %3981 = vst [vmem:[#allocation38_spill] sm:$0xff] %v3611_v1  ;;  %vm1726_vm9 = vcmp.lt.s32.totalorder %v3592_v62, 288  ;;  %v1820_v1 = vsel %vm1724_vm7, %v2957_v25, 0.0  ;;  %v1847_v15 = vsel %vm1719_vm2, %v3235_v9, 0.0  ;;  %v1848_v19 = vsel %vm1720_vm3, %v3241_v42, 0.0 }
 0x352   : > { %3982 = vst [vmem:[#allocation39_spill] sm:$0xff] %v3621_v38  ;;  %v1883_v58 = vmul.f32 %v1819_v4, %v1819_v4  ;;  %v1912_v20 = vadd.f32 %v1911_v41, %v1881_v0  ;;  %v3635_v53 = vadd.s32 232, %v2707_v29  ;;  %v3638_v52 = vadd.s32 240, %v2707_v29 }
 0x353   : > { %v3641_v38 = vadd.s32 %v3524_v11, %v1663_v7  ;;  %v1821_v25 = vsel %vm1725_vm8, %v2974_v35, 0.0  ;;  %vm1727_vm10 = vcmp.lt.s32.totalorder %v3617_v30, 288  ;;  %v1849_v9 = vsel %vm1721_vm4, %v3252_v18, 0.0 }
 0x354   : > { %v1884_v42 = vmul.f32 %v1820_v1, %v1820_v1  ;;  %v1913_v23 = vadd.f32 %v1912_v20, %v1882_v17  ;;  %v3650_v34 = vadd.s32 %v3524_v11, %v1664_v50  ;;  %v1822_v0 = vsel %vm1726_vm9, %v2971_v39, 0.0 }
 0x355   : > { %v1949_v7 = vmul.f32 %v1847_v15, %v1847_v15  ;;  %v1950_v4 = vmul.f32 %v1848_v19, %v1848_v19  ;;  %vm1728_vm11 = vcmp.lt.s32.totalorder %v3624_v56, 288  ;;  %v1850_v35 = vsel %vm1722_vm5, %v3261_v33, 0.0 }
 0x356   : > { %v1885_v41 = vmul.f32 %v1821_v25, %v1821_v25  ;;  %v1914_v51 = vadd.f32 %v1913_v23, %v1883_v58  ;;  %v3660_v18 = vadd.s32 248, %v2707_v29  ;;  %v3663_v17 = vadd.s32 %v3524_v11, %v1665_v55 }
 0x357   : > { %v1823_v39 = vsel %vm1727_vm10, %v2988_v44, 0.0  ;;  %v1951_v50 = vmul.f32 %v1849_v9, %v1849_v9  ;;  %vm1729_vm12 = vcmp.lt.s32.totalorder %v3641_v38, 288  ;;  %v1851_v10 = vsel %vm1723_vm6, %v3270_v13, 0.0 }
 0x358   : > { %v1886_v33 = vmul.f32 %v1822_v0, %v1822_v0  ;;  %v1915_v1 = vadd.f32 %v1914_v51, %v1884_v42  ;;  %v3674_v29 = vadd.s32 %v3524_v11, %v3545_v46  ;;  %v1824_v55 = vsel %vm1728_vm11, %v2985_v48, 0.0 }
 0x359   : > { %v1952_v15 = vmul.f32 %v1850_v35, %v1850_v35  ;;  %v1981_v19 = vadd.f32 %v1950_v4, %v1949_v7  ;;  %vm1730_vm13 = vcmp.lt.s32.totalorder %v3650_v34, 288  ;;  %v1852_v44 = vsel %vm1724_vm7, %v3279_v32, 0.0 }
 0x35a   : > { %v1887_v14 = vmul.f32 %v1823_v39, %v1823_v39  ;;  %v1916_v13 = vadd.f32 %v1915_v1, %v1885_v41  ;;  %v3685_v58 = vadd.s32 %v3524_v11, %v3551_v36  ;;  %v1825_v46 = vsel %vm1729_vm12, %v3007_v47, 0.0 }
 0x35b   : > { %v1953_v20 = vmul.f32 %v1851_v10, %v1851_v10  ;;  %v1982_v48 = vadd.f32 %v1981_v19, %v1951_v50  ;;  %vm1731_vm14 = vcmp.lt.s32.totalorder %v3663_v17, 288  ;;  %v1853_v25 = vsel %vm1725_vm8, %v3288_v28, 0.0 }
 0x35c   : > { %v1888_v24 = vmul.f32 %v1824_v55, %v1824_v55  ;;  %v1917_v32 = vadd.f32 %v1916_v13, %v1886_v33  ;;  %v3696_v9 = vadd.s32 %v3524_v11, %v3554_v37  ;;  %v1826_v36 = vsel %vm1730_vm13, %v3005_v43, 0.0 }
 0x35d   : > { %v1954_v42 = vmul.f32 %v1852_v44, %v1852_v44  ;;  %v1983_v47 = vadd.f32 %v1982_v48, %v1952_v15  ;;  %vm1732_vm15 = vcmp.lt.s32.totalorder %v3674_v29, 288  ;;  %v1854_v23 = vsel %vm1726_vm9, %v3297_v60, 0.0 }
 0x35e   : > { %v1889_v61 = vmul.f32 %v1825_v46, %v1825_v46  ;;  %v1918_v28 = vadd.f32 %v1917_v32, %v1887_v14  ;;  %v3707_v0 = vadd.s32 %v3524_v11, %v3561_v16  ;;  %v1827_v37 = vsel %vm1731_vm14, %v3029_v21, 0.0  ;;  %v3985_v32 = vld [vmem:[#allocation16_spill] sm:$0xff] }
 0x35f   : > { %v1955_v7 = vmul.f32 %v1853_v25, %v1853_v25  ;;  %v1984_v43 = vadd.f32 %v1983_v47, %v1953_v20  ;;  %vm1733_vm0 = vcmp.lt.s32.totalorder %v3685_v58, 288  ;;  %v1855_v4 = vsel %vm1727_vm10, %v3306_v8, 0.0  ;;  %v3983_v20 = vld [vmem:[#allocation34_spill] sm:$0xff] }
 0x360   : > { %v1890_v62 = vmul.f32 %v1826_v36, %v1826_v36  ;;  %v1919_v60 = vadd.f32 %v1918_v28, %v1888_v24  ;;  %v3718_v35 = vadd.s32 %v3524_v11, %v3564_v22  ;;  %v1828_v16 = vsel %vm1732_vm15, %v3022_v12, 0.0 }
 0x361   : > { %v1956_v41 = vmul.f32 %v1854_v23, %v1854_v23  ;;  %v1985_v21 = vadd.f32 %v1984_v43, %v1954_v42  ;;  %vm1734_vm1 = vcmp.lt.s32.totalorder %v3696_v9, 288  ;;  %v1856_v51 = vsel %vm1728_vm11, %v3315_v40, 0.0  ;;  %v3986_v42 = vld [vmem:[#allocation35_spill] sm:$0xff]  ;;  %v3987_v23 = vld [vmem:[#allocation2_spill] sm:$0xff] }
 0x362   : > { %v1891_v30 = vmul.f32 %v1827_v37, %v1827_v37  ;;  %v1920_v8 = vadd.f32 %v1919_v60, %v1889_v61  ;;  %v3729_v39 = vadd.s32 %v3524_v11, %v3571_v49  ;;  %v1829_v22 = vsel %vm1733_vm0, %v3047_v59, 0.0 }
 0x363   : > { %v1957_v50 = vmul.f32 %v1855_v4, %v1855_v4  ;;  %v1986_v12 = vadd.f32 %v1985_v21, %v1955_v7  ;;  %vm1735_vm2 = vcmp.lt.s32.totalorder %v3707_v0, 288  ;;  %v1857_v10 = vsel %vm1729_vm12, %v3324_v2, 0.0  ;;  %v3988_v7 = vld [vmem:[#allocation17_spill] sm:$0xff] }
 0x364   : > { %v1892_v56 = vmul.f32 %v1828_v16, %v1828_v16  ;;  %v1921_v40 = vadd.f32 %v1920_v8, %v1890_v62  ;;  %v3740_v33 = vadd.s32 %v3524_v11, %v3574_v6  ;;  %v1830_v49 = vsel %vm1734_vm1, %v3044_v54, 0.0  ;;  %v3989_v62 = vld [vmem:[#allocation36_spill] sm:$0xff]  ;;  %v3990_v16 = vld [vmem:[#allocation5_spill] sm:$0xff] }
 0x365   : > { %v1958_v1 = vmul.f32 %v1856_v51, %v1856_v51  ;;  %v1987_v59 = vadd.f32 %v1986_v12, %v1956_v41  ;;  %vm1736_vm3 = vcmp.lt.s32.totalorder %v3718_v35, 288  ;;  %v1858_v55 = vsel %vm1730_vm13, %v3333_v63, 0.0 }
 0x366   : > { %v1893_v38 = vmul.f32 %v1829_v22, %v1829_v22  ;;  %v1922_v2 = vadd.f32 %v1921_v40, %v1891_v30  ;;  %v3751_v15 = vadd.s32 %v3524_v11, %v3577_v45  ;;  %v1831_v6 = vsel %vm1735_vm2, %v3065_v27, 0.0  ;;  %v3991_v30 = vld [vmem:[#allocation18_spill] sm:$0xff] }
 0x367   : > { %v1959_v19 = vmul.f32 %v1857_v10, %v1857_v10  ;;  %v1988_v54 = vadd.f32 %v1987_v59, %v1957_v50  ;;  %vm1737_vm4 = vcmp.lt.s32.totalorder %v3729_v39, 288  ;;  %v1859_v44 = vsel %vm1731_vm14, %v3342_v57, 0.0  ;;  %v3992_v50 = vld [vmem:[#allocation37_spill] sm:$0xff]  ;;  %v3993_v10 = vld [vmem:[#allocation4_spill] sm:$0xff] }
 0x368   : > { %v1894_v34 = vmul.f32 %v1830_v49, %v1830_v49  ;;  %v1923_v63 = vadd.f32 %v1922_v2, %v1892_v56  ;;  %v3762_v14 = vadd.s32 %v3524_v11, %v3586_v31  ;;  %v1832_v45 = vsel %vm1736_vm3, %v3062_v26, 0.0  ;;  %v3984_v31 = vld [vmem:[#allocation3_spill] sm:$0xff] }
 0x369   : > { %v1960_v13 = vmul.f32 %v1858_v55, %v1858_v55  ;;  %v1989_v27 = vadd.f32 %v1988_v54, %v1958_v1  ;;  %vm1738_vm5 = vcmp.lt.s32.totalorder %v3740_v33, 288  ;;  %v1860_v46 = vsel %vm1732_vm15, %v3351_v5, 0.0  ;;  %v3994_v1 = vld [vmem:[#allocation19_spill] sm:$0xff] }
 0x36a   : > { %v1895_v17 = vmul.f32 %v1831_v6, %v1831_v6  ;;  %v1924_v57 = vadd.f32 %v1923_v63, %v1893_v38  ;;  %v3773_v48 = vadd.s32 %v3524_v11, %v3983_v20  ;;  %v1833_v25 = vsel %vm1737_vm4, %v3984_v31, 0.0  ;;  %v3995_v2 = vld [vmem:[#allocation7_spill] sm:$0xff] }
 0x36b   : > { %v1961_v24 = vmul.f32 %v1859_v44, %v1859_v44  ;;  %v1990_v26 = vadd.f32 %v1989_v27, %v1959_v19  ;;  %vm1739_vm6 = vcmp.lt.s32.totalorder %v3751_v15, 288  ;;  %v1861_v36 = vsel %vm1733_vm0, %v3985_v32, 0.0  ;;  %v3996_v44 = vld [vmem:[#allocation20_spill] sm:$0xff] }
 0x36c   : > { %v1896_v29 = vmul.f32 %v1832_v45, %v1832_v45  ;;  %v1925_v5 = vadd.f32 %v1924_v57, %v1894_v34  ;;  %v3784_v47 = vadd.s32 %v3524_v11, %v3986_v42  ;;  %v1834_v61 = vsel %vm1738_vm5, %v3987_v23, 0.0  ;;  %v3997_v45 = vld [vmem:[#allocation38_spill] sm:$0xff]  ;;  %v3999_v57 = vld [vmem:[#allocation21_spill] sm:$0xff] }
 0x36d   : > { %v1962_v28 = vmul.f32 %v1860_v46, %v1860_v46  ;;  %v1991_v37 = vadd.f32 %v1990_v26, %v1960_v13  ;;  %vm1740_vm7 = vcmp.lt.s32.totalorder %v3762_v14, 288  ;;  %v1862_v43 = vsel %vm1734_vm1, %v3988_v7, 0.0  ;;  %v4001_v26 = vld [vmem:[#allocation9_spill] sm:$0xff] }
 0x36e   : > { %v1897_v58 = vmul.f32 %v1833_v25, %v1833_v25  ;;  %v1926_v4 = vadd.f32 %v1925_v5, %v1895_v17  ;;  %v3795_v60 = vadd.s32 %v3524_v11, %v3989_v62  ;;  %v1835_v41 = vsel %vm1739_vm6, %v3990_v16, 0.0  ;;  %v4000_v25 = vld [vmem:[#allocation39_spill] sm:$0xff]  ;;  %v4002_v5 = vld [vmem:[#allocation22_spill] sm:$0xff] }
 0x36f   : > { %v1963_v21 = vmul.f32 %v1861_v36, %v1861_v36  ;;  %v1992_v51 = vadd.f32 %v1991_v37, %v1961_v24  ;;  %vm1741_vm8 = vcmp.lt.s32.totalorder %v3773_v48, 288  ;;  %v1863_v8 = vsel %vm1735_vm2, %v3991_v30, 0.0  ;;  %v4006_v30 = vld [vmem:[#allocation24_spill] sm:$0xff]  ;;  %v4009_v48 = vld [vmem:[#allocation13_spill] sm:$0xff] }
 0x370   : > { %v1898_v9 = vmul.f32 %v1834_v61, %v1834_v61  ;;  %v1927_v22 = vadd.f32 %v1926_v4, %v1896_v29  ;;  %v3806_v12 = vadd.s32 %v3524_v11, %v3992_v50  ;;  %v1836_v56 = vsel %vm1740_vm7, %v3993_v10, 0.0  ;;  %v4007_v50 = vld [vmem:[#allocation10_spill] sm:$0xff] }
 0x371   : > { %v1964_v40 = vmul.f32 %v1862_v43, %v1862_v43  ;;  %v1993_v49 = vadd.f32 %v1992_v51, %v1962_v28  ;;  %vm1742_vm9 = vcmp.lt.s32.totalorder %v3784_v47, 288  ;;  %v1864_v59 = vsel %vm1736_vm3, %v3994_v1, 0.0  ;;  %v4003_v28 = vld [vmem:[#allocation8_spill] sm:$0xff] }
 0x372   : > { %v1899_v0 = vmul.f32 %v1835_v41, %v1835_v41  ;;  %v1928_v55 = vadd.f32 %v1927_v22, %v1897_v58  ;;  %v3817_v38 = vadd.s32 %v3524_v11, %v3608_v3  ;;  %v1837_v6 = vsel %vm1741_vm8, %v3995_v2, 0.0  ;;  %v3998_v3 = vld [vmem:[#allocation6_spill] sm:$0xff]  ;;  %v4004_v58 = vld [vmem:[#allocation23_spill] sm:$0xff] }
 0x373   : > { %v1965_v19 = vmul.f32 %v1863_v8, %v1863_v8  ;;  %v1994_v54 = vadd.f32 %v1993_v49, %v1963_v21  ;;  %vm1743_vm10 = vcmp.lt.s32.totalorder %v3795_v60, 288  ;;  %v1865_v34 = vsel %vm1737_vm4, %v3996_v44, 0.0  ;;  %v4005_v41 = vld [vmem:[#allocation11_spill] sm:$0xff] }
 0x374   : > { %v1900_v35 = vmul.f32 %v1836_v56, %v1836_v56  ;;  %v1929_v63 = vadd.f32 %v1928_v55, %v1898_v9  ;;  %v3828_v13 = vadd.s32 %v3524_v11, %v3997_v45  ;;  %v1838_v27 = vsel %vm1742_vm9, %v3998_v3, 0.0 }
 0x375   : > { %v1966_v46 = vmul.f32 %v1864_v59, %v1864_v59  ;;  %v1995_v17 = vadd.f32 %v1994_v54, %v1964_v40  ;;  %vm1744_vm11 = vcmp.lt.s32.totalorder %v3806_v12, 288  ;;  %v1866_v20 = vsel %vm1738_vm5, %v3999_v57, 0.0  ;;  %v4008_v40 = vld [vmem:[#allocation25_spill] sm:$0xff]  ;;  %v4011_v54 = vld [vmem:[#allocation12_spill] sm:$0xff] }
 0x376   : > { %v1901_v39 = vmul.f32 %v1837_v6, %v1837_v6  ;;  %v1930_v31 = vadd.f32 %v1929_v63, %v1899_v0  ;;  %v1715_v24 = vadd.s32 %v3524_v11, %v4000_v25  ;;  %v1839_v32 = vsel %vm1743_vm10, %v4001_v26, 0.0  ;;  %v4014_v57 = vld [vmem:[#allocation28_spill] sm:$0xff]  ;;  %v4015_v25 = vld [vmem:[#allocation14_spill] sm:$0xff]  ;;  %v4016_v12 = vld [vmem:[#allocation29_spill] sm:$0xff] }
 0x377   : > { %v1967_v36 = vmul.f32 %v1865_v34, %v1865_v34  ;;  %v1996_v29 = vadd.f32 %v1995_v17, %v1965_v19  ;;  %vm1745_vm12 = vcmp.lt.s32.totalorder %v3817_v38, 288  ;;  %v1867_v42 = vsel %vm1739_vm6, %v4002_v5, 0.0 }
 0x378   : > { %v1902_v23 = vmul.f32 %v1838_v27, %v1838_v27  ;;  %v1931_v33 = vadd.f32 %v1930_v31, %v1900_v35  ;;  %v1716_v61 = vadd.s32 %v3524_v11, %v3635_v53  ;;  %v1840_v37 = vsel %vm1744_vm11, %v4003_v28, 0.0  ;;  %v4012_v35 = vld [vmem:[#allocation27_spill] sm:$0xff]  ;;  %v4017_v28 = vld [vmem:[#allocation30_spill] sm:$0xff] }
 0x379   : > { %v1968_v7 = vmul.f32 %v1866_v20, %v1866_v20  ;;  %v1997_v43 = vadd.f32 %v1996_v29, %v1966_v46  ;;  %vm1746_vm13 = vcmp.lt.s32.totalorder %v3828_v13, 288  ;;  %v1868_v4 = vsel %vm1740_vm7, %v4004_v58, 0.0  ;;  %v4013_v27 = vld [vmem:[#allocation15_spill] sm:$0xff] }
 0x37a   : > { %v1903_v62 = vmul.f32 %v1839_v32, %v1839_v32  ;;  %v1932_v15 = vadd.f32 %v1931_v33, %v1901_v39  ;;  %v1717_v16 = vadd.s32 %v3524_v11, %v3638_v52  ;;  %v1841_v53 = vsel %vm1745_vm12, %v4005_v41, 0.0 }
 0x37b   : > { %v1969_v21 = vmul.f32 %v1867_v42, %v1867_v42  ;;  %v1998_v51 = vadd.f32 %v1997_v43, %v1967_v36  ;;  %vm1747_vm14 = vcmp.lt.s32.totalorder %v1715_v24, 288  ;;  %v1869_v8 = vsel %vm1741_vm8, %v4006_v30, 0.0 }
 0x37c   : > { %v1904_v9 = vmul.f32 %v1840_v37, %v1840_v37  ;;  %v1933_v22 = vadd.f32 %v1932_v15, %v1902_v23  ;;  %v1718_v14 = vadd.s32 %v3524_v11, %v3660_v18  ;;  %v1842_v52 = vsel %vm1746_vm13, %v4007_v50, 0.0  ;;  %v4010_v11 = vld [vmem:[#allocation26_spill] sm:$0xff] }
 0x37d   : > { %v1970_v10 = vmul.f32 %v1868_v4, %v1868_v4  ;;  %v1999_v56 = vadd.f32 %v1998_v51, %v1968_v7  ;;  %vm1748_vm15 = vcmp.lt.s32.totalorder %v1716_v61, 288  ;;  %v1870_v49 = vsel %vm1742_vm9, %v4008_v40, 0.0  ;;  %v4018_v4 = vld [vmem:[#allocation31_spill] sm:$0xff] }
 0x37e   : > { %v1905_v1 = vmul.f32 %v1841_v53, %v1841_v53  ;;  %v1934_v59 = vadd.f32 %v1933_v22, %v1903_v62  ;;  %v1843_v0 = vsel %vm1747_vm14, %v4009_v48, 0.0  ;;  %v1971_v55 = vmul.f32 %v1869_v8, %v1869_v8 }
 0x37f   : > { %v2000_v2 = vadd.f32 %v1999_v56, %v1969_v21  ;;  %vm1749_vm0 = vcmp.lt.s32.totalorder %v1717_v16, 288  ;;  %v1871_v18 = vsel %vm1743_vm10, %v4010_v11, 0.0  ;;  %v1906_v6 = vmul.f32 %v1842_v52, %v1842_v52  ;;  %v4019_v21 = vld [vmem:[#allocation32_spill] sm:$0xff] }
 0x380   : > { %v1935_v19 = vadd.f32 %v1934_v59, %v1904_v9  ;;  %v1844_v44 = vsel %vm1748_vm15, %v4011_v54, 0.0  ;;  %v1972_v34 = vmul.f32 %v1870_v49, %v1870_v49  ;;  %vm1750_vm1 = vcmp.lt.s32.totalorder %v1718_v14, 288  ;;  %v4020_v9 = vld [vmem:[#allocation33_spill] sm:$0xff] }
 0x381   : > { %v2001_v47 = vadd.f32 %v2000_v2, %v1970_v10  ;;  %v1872_v63 = vsel %vm1744_vm11, %v4012_v35, 0.0  ;;  %v1907_v45 = vmul.f32 %v1843_v0, %v1843_v0  ;;  %v1845_v46 = vsel %vm1749_vm0, %v4013_v27, 0.0 }
 0x382   : > { %v1936_v3 = vadd.f32 %v1935_v19, %v1905_v1  ;;  %v1973_v17 = vmul.f32 %v1871_v18, %v1871_v18  ;;  %v1873_v20 = vsel %vm1745_vm12, %v4014_v57, 0.0  ;;  %v1908_v39 = vmul.f32 %v1844_v44, %v1844_v44 }
 0x383   : > { %v2002_v60 = vadd.f32 %v2001_v47, %v1971_v55  ;;  %v1846_v26 = vsel %vm1750_vm1, %v4015_v25, 0.0  ;;  %v1974_v32 = vmul.f32 %v1872_v63, %v1872_v63  ;;  %v1874_v29 = vsel %vm1746_vm13, %v4016_v12, 0.0 }
 0x384   : > { %v1937_v31 = vadd.f32 %v1936_v3, %v1906_v6  ;;  %v1909_v5 = vmul.f32 %v1845_v46, %v1845_v46  ;;  %v1975_v23 = vmul.f32 %v1873_v20, %v1873_v20  ;;  %v1875_v37 = vsel %vm1747_vm14, %v4017_v28, 0.0 }
 0x385   : > { %v2003_v36 = vadd.f32 %v2002_v60, %v1972_v34  ;;  %v1910_v38 = vmul.f32 %v1846_v26, %v1846_v26  ;;  %v1976_v43 = vmul.f32 %v1874_v29, %v1874_v29  ;;  %v1876_v62 = vsel %vm1748_vm15, %v4018_v4, 0.0 }
 0x386   : > { %v1938_v42 = vadd.f32 %v1937_v31, %v1907_v45  ;;  %v1977_v41 = vmul.f32 %v1875_v37, %v1875_v37  ;;  %v1877_v13 = vsel %vm1749_vm0, %v4019_v21, 0.0  ;;  %v1978_v30 = vmul.f32 %v1876_v62, %v1876_v62 }
 0x387   : > { %v2004_v33 = vadd.f32 %v2003_v36, %v1973_v17  ;;  %v1878_v24 = vsel %vm1750_vm1, %v4020_v9, 0.0  ;;  %v1979_v50 = vmul.f32 %v1877_v13, %v1877_v13 }
 0x388   : > { %v1939_v7 = vadd.f32 %v1938_v42, %v1908_v39  ;;  %v1980_v61 = vmul.f32 %v1878_v24, %v1878_v24 }
 0x389   : > { %v2005_v58 = vadd.f32 %v2004_v33, %v1974_v32 }
 0x38a   : > { %v1940_v15 = vadd.f32 %v1939_v7, %v1909_v5 }
 0x38b   : > { %v2006_v53 = vadd.f32 %v2005_v58, %v1975_v23 }
 0x38c   : > { %v1941_v51 = vadd.f32 %v1940_v15, %v1910_v38 }
 0x38d   : > { %v2007_v8 = vadd.f32 %v2006_v53, %v1976_v43 }
 0x38e   : > { %v1942_v22 = vrot.slane %v1941_v51, 4 }
 0x38f   : > { %v2008_v52 = vadd.f32 %v2007_v8, %v1977_v41 }
 0x390   : > { %v1943_v10 = vadd.f32 %v1942_v22, %v1941_v51 }
 0x391   : > { %v2009_v56 = vadd.f32 %v2008_v52, %v1978_v30 }
 0x392   : > { %v1944_v40 = vrot.slane %v1943_v10, 2 }
 0x393   : > { %v2010_v49 = vadd.f32 %v2009_v56, %v1979_v50 }
 0x394   : > { %v1945_v1 = vadd.f32 %v1944_v40, %v1943_v10 }
 0x395   : > { %v2011_v59 = vadd.f32 %v2010_v49, %v1980_v61 }
 0x396   : > { %v1946_v16 = vrot.slane %v1945_v1, 1 }
 0x397   : > { %v2012_v48 = vrot.slane %v2011_v59, 4 }
 0x398   : > { %v1947_v0 = vadd.f32 %v1946_v16, %v1945_v1 }
 0x399   : > { %v2013_v55 = vadd.f32 %v2012_v48, %v2011_v59 }
 0x39a   : > { %1948 = vst [vmem:[%s2565_s12] sm:$0x1] %v1947_v0 }
 0x39b   : > { %v2014_v2 = vrot.slane %v2013_v55, 2 }
 0x39d   : > { %v2015_v14 = vadd.f32 %v2014_v2, %v2013_v55 }
 0x39f   : > { %v2016_v11 = vrot.slane %v2015_v14, 1 }
 0x3a1   : > { %v2017_v18 = vadd.f32 %v2016_v11, %v2015_v14 }
 0x3a3   : > { %2018 = vst [vmem:[%s2565_s12 + $0x1] sm:$0x1] %v2017_v18 }
 0x3a4 PF: > { %s19_s27 = sadd.s32 1, %s2468_s27  }
 0x3a5   : > { %p16_p7 = scmp.ge.s32.totalorder %s19_s27, 4  }
 0x3a7   :  { %18 = sbr.rel (!%p16_p7) target bundleno = 1 (0x1), region = 98 }

</bundles_post_ra>
